<compile_context>
chip_gen: v7x
topology: tpu7x:2x2x1
jax: 0.10.0
libtpu: 0.0.40
codegen_flags: <defaults>
</compile_context>

<pallas_src>
import functools
import math

import jax
import jax.numpy as jnp
from jax import lax
from jax.experimental import pallas as pl
from jax.experimental.pallas import tpu as pltpu


def _padded_residual_kernel(x_ref, sel_ref, o_ref, *, nb, cg, coutg, padg,
                            precision):
    # x_ref:   (nb*cg,    g*H*W)   one row = g consecutive input channels of one n
    # sel_ref: (g*H*W,    g*Ho*Wo) constant block-diagonal one-hot subsample selector
    # o_ref:   (nb*coutg, g*Ho*Wo) one row = g consecutive output channels of one n
    lanes = o_ref.shape[-1]
    sel = sel_ref[...]

    # Real channels: one small matmul per batch element (M = C/g rows), stored
    # directly into its real-channel rows -- no output-sized VMEM intermediate.
    # Static unroll; nb is bounded by the block picker.
    for b in range(nb):
        sub = jnp.dot(x_ref[b * cg:(b + 1) * cg, :], sel,
                      precision=precision,
                      preferred_element_type=jnp.float32)
        dst = b * coutg + padg
        o_ref[dst:dst + cg, :] = jnp.maximum(sub, 0.0).astype(o_ref.dtype)

    # Pad channels: relu(0) == 0, so plain zero fills are exact.  The trailing
    # pad of element b and the leading pad of element b+1 are contiguous rows
    # and are merged into a single store (minimises store-slot pressure).
    if padg > 0:
        zedge = jnp.zeros((padg, lanes), o_ref.dtype)
        o_ref[0:padg, :] = zedge                              # leading pad, first elem
        o_ref[nb * coutg - padg:nb * coutg, :] = zedge        # trailing pad, last elem
        if nb > 1:
            zmid = jnp.zeros((2 * padg, lanes), o_ref.dtype)
            for b in range(nb - 1):
                s = b * coutg + padg + cg
                o_ref[s:s + 2 * padg, :] = zmid


def _pick_fold(c, pad, ho, wo):
    """Channels folded per row: smallest legal fold giving >= 128 output lanes.

    Folding multiplies MXU flops and selector bytes by g, so stop as soon as
    the output row is lane-dense.  g must divide C, pad and (hence) Cout so
    that real and pad channels stay on whole-row boundaries.
    """
    g_max = math.gcd(c, pad) if pad > 0 else c
    howo = ho * wo
    best = 1
    for g in range(1, g_max + 1):
        if g_max % g != 0:
            continue
        best = g
        if g * howo >= 128:
            break
    return best


def _pick_batch_block(n, rows_in, rows_out, in_bytes_per_n, itemsize):
    """Batch elements per grid step.

    Largest divisor of N such that:
      * non-full blocks stay sublane-aligned for the dtype (8/16/32 rows),
      * per-step input is ~<= 6 MiB (amortises ~0.35 us/step fixed overhead),
      * there remain >= 2 (ideally >= 4) grid steps so v7x's two TensorCores
        both get work on the "parallel" batch axis,
      * the in-kernel static unroll stays bounded (<= 64).
    Using a divisor of N means no partial (OOB-padded) last block exists.
    """
    sub = {4: 8, 2: 16, 1: 32}.get(itemsize, 8)

    def aligned(d):
        return d == n or ((d * rows_in) % sub == 0 and (d * rows_out) % sub == 0)

    divisors = [d for d in range(1, n + 1) if n % d == 0 and aligned(d)]
    byte_cap = max(1, (6 << 20) // max(in_bytes_per_n, 1))
    grid_cap = n
    if n >= 4 and (n // 4) * in_bytes_per_n >= (2 << 20):
        grid_cap = n // 4
    elif n >= 2:
        grid_cap = n // 2
    cap = min(byte_cap, grid_cap, 64)
    ok = [d for d in divisors if d <= cap]
    if ok:
        return max(ok)
    return min(divisors)        # tiny / unaligned cases: smallest legal block


def padded_residual(x, planes):
    """relu(option-A padded shortcut(x)) as a single fused Pallas TPU kernel."""
    # TODO(synk): PaddedResidual is generic over lambda_fn; this implements the
    # resnet_s option-A shortcut lambda, the only lambda used in models/resnet_s.py.
    N, C, H, W = x.shape
    pad = planes // 4
    Ho, Wo = (H + 1) // 2, (W + 1) // 2      # matches PyTorch ::2 (ceil) for odd H/W
    Cout = C + 2 * pad
    dtype = x.dtype
    itemsize = jnp.dtype(dtype).itemsize

    # Channel fold for lane-dense output rows.
    g = _pick_fold(C, pad, Ho, Wo)
    cg, coutg, padg = C // g, Cout // g, pad // g

    # Constant block-diagonal one-hot selector implementing the (::2, ::2)
    # subsample directly in the folded lane-dense layout:
    #   sel[k*H*W + h*W + w, k'*Ho*Wo + i*Wo + j] = 1  iff  k==k', h==2i, w==2j
    row_sel = jnp.arange(H)[:, None] == 2 * jnp.arange(Ho)[None, :]      # (H, Ho)
    col_sel = jnp.arange(W)[:, None] == 2 * jnp.arange(Wo)[None, :]      # (W, Wo)
    pix = (row_sel[:, None, :, None] & col_sel[None, :, None, :])
    pix = pix.reshape(H * W, Ho * Wo).astype(jnp.float32)
    sel = jnp.kron(jnp.eye(g, dtype=jnp.float32), pix).astype(dtype)

    # Free (contiguous) lane-dense 2-D view of the NCHW input.
    x2 = x.reshape(N * cg, g * H * W)

    in_bytes_per_n = C * H * W * itemsize
    nb = _pick_batch_block(N, cg, coutg, in_bytes_per_n, itemsize)
    grid = (N // nb,)

    # Exact gather on the MXU: f32 operands need HIGHEST precision (default
    # may demote to a single bf16 pass and round every shortcut activation);
    # bf16 is exact with the default single pass.
    precision = lax.Precision.HIGHEST if dtype == jnp.float32 else None

    kernel = functools.partial(_padded_residual_kernel, nb=nb, cg=cg,
                               coutg=coutg, padg=padg, precision=precision)

    # VMEM budget: double-buffered in/out blocks + (constant, conservatively
    # counted double-buffered) selector + slack.  Raise the scoped limit
    # explicitly (v5e default is 16 MiB); cap well under v7x's 64 MiB physical.
    in_block = nb * cg * g * H * W * itemsize
    out_block = nb * coutg * g * Ho * Wo * itemsize
    sel_bytes = sel.size * itemsize
    vmem_need = 2 * in_block + 2 * out_block + 2 * sel_bytes + (2 << 20)
    vmem_limit = int(min(48 << 20, max(32 << 20, vmem_need)))

    flops = 2 * (N * cg) * (g * H * W) * (g * Ho * Wo)
    bytes_accessed = (x.size * itemsize
                      + N * Cout * Ho * Wo * itemsize
                      + sel_bytes)

    out2 = pl.pallas_call(
        kernel,
        out_shape=jax.ShapeDtypeStruct((N * coutg, g * Ho * Wo), dtype),
        grid=grid,
        in_specs=[
            # Leading block dims are either the full extent or dtype-aware
            # sublane-aligned (see _pick_batch_block); last dims are full extent.
            pl.BlockSpec((nb * cg, g * H * W), lambda n: (n, 0)),
            # Constant selector: block index never changes, so it is DMA'd from
            # HBM once per core and not re-fetched on later grid steps.
            pl.BlockSpec((g * H * W, g * Ho * Wo), lambda n: (0, 0)),
        ],
        out_specs=pl.BlockSpec((nb * coutg, g * Ho * Wo), lambda n: (n, 0)),
        compiler_params=pltpu.CompilerParams(
            dimension_semantics=("parallel",),   # batch axis splits across v7x's 2 TCs
            vmem_limit_bytes=vmem_limit,
        ),
        cost_estimate=pl.CostEstimate(flops=flops, transcendentals=0,
                                      bytes_accessed=bytes_accessed),
    )(x2, sel)

    return out2.reshape(N, Cout, Ho, Wo)


def _reference(x, planes):
    pad = planes // 4
    out = jnp.pad(x[:, :, ::2, ::2], ((0, 0), (pad, pad), (0, 0), (0, 0)))
    return jnp.maximum(out, 0.0).astype(x.dtype)


if __name__ == "__main__":
    key = jax.random.PRNGKey(0)
    k1, k2 = jax.random.split(key)

    # Small resnet_s-style option-A shortcut: N=2, C=4, 16x16, planes=8
    # (channel pad of planes // 4 = 2 per side, output 8 channels @ 8x8).
    N, C, H, W = 2, 4, 16, 16
    planes = 8

    # f32 path (PyTorch default dtype): gather must be (bit-)exact.
    x = jax.random.normal(k1, (N, C, H, W), dtype=jnp.float32)
    out = jax.block_until_ready(padded_residual(x, planes))
    ref = _reference(x, planes)
    assert out.shape == ref.shape, (out.shape, ref.shape)
    assert jnp.allclose(out, ref, atol=1e-6, rtol=1e-6), "f32 mismatch vs reference"

    # bf16 path (pass-through dtype halves HBM traffic for bf16 nets).
    xb = x.astype(jnp.bfloat16)
    outb = jax.block_until_ready(padded_residual(xb, planes))
    refb = _reference(xb, planes)
    assert outb.dtype == jnp.bfloat16
    assert jnp.allclose(outb.astype(jnp.float32), refb.astype(jnp.float32),
                        atol=1e-2, rtol=1e-2), "bf16 mismatch vs reference"

    # Second small shape: exercises the g=2 channel fold, nb < N (multi-step
    # "parallel" grid) and merged pad stores between batch elements in a block.
    x3 = jax.random.normal(k2, (8, 16, 16, 16), dtype=jnp.float32)
    out3 = jax.block_until_ready(padded_residual(x3, 32))
    ref3 = _reference(x3, 32)
    assert out3.shape == ref3.shape, (out3.shape, ref3.shape)
    assert jnp.allclose(out3, ref3, atol=1e-6, rtol=1e-6), "multi-block mismatch vs reference"

    print("KERNEL_OK")
</pallas_src>

<mosaic_0001>
module attributes {stable_mosaic.version = 11 : i64} {
  func.func @_padded_residual_kernel(%arg0: i32, %arg1: memref<4x512xf32, #tpu.memory_space<vmem>>, %arg2: memref<512x128xf32, #tpu.memory_space<vmem>>, %arg3: memref<8x128xf32, #tpu.memory_space<vmem>>) attributes {dimension_semantics = [#tpu.dimension_semantics<parallel>], iteration_bounds = array<i64: 1>, scalar_prefetch = 0 : i64, scratch_operands = 0 : i64, tpu.core_type = #tpu.core_type<tc>, window_params = [{transform_indices = @transform_0, window_bounds = array<i64: 4, 512>}, {pipeline_mode = #tpu.pipeline_mode<synchronous>, transform_indices = @transform_1, window_bounds = array<i64: 512, 128>}, {transform_indices = @transform_2, window_bounds = array<i64: 8, 128>}]} {
    %c0 = arith.constant 0 : index
    %c0_0 = arith.constant 0 : index
    %0 = vector.load %arg2[%c0, %c0_0] : memref<512x128xf32, #tpu.memory_space<vmem>>, vector<512x128xf32>
    %c0_1 = arith.constant 0 : index
    %c0_2 = arith.constant 0 : index
    %1 = vector.load %arg1[%c0_1, %c0_2] : memref<4x512xf32, #tpu.memory_space<vmem>>, vector<2x512xf32>
    %cst = arith.constant dense<0.000000e+00> : vector<2x128xf32>
    %2 = tpu.matmul %1, %0, %cst {dimension_numbers = #tpu.dot_dimension_numbers<[1], [0], [0], [1], [0, 0, 1, 1], [], []>, precision = #tpu.contract_precision<fp32>} : vector<2x512xf32>, vector<512x128xf32>, vector<2x128xf32> -> vector<2x128xf32>
    %cst_3 = arith.constant 0.000000e+00 : f32
    %3 = vector.broadcast %cst_3 : f32 to vector<2x128xf32>
    %4 = arith.maximumf %2, %3 : vector<2x128xf32>
    %c1 = arith.constant 1 : index
    %c0_4 = arith.constant 0 : index
    %5 = vector.load %arg3[%c1, %c0_4] : memref<8x128xf32, #tpu.memory_space<vmem>>, vector<2x128xf32>
    tpu.vector_store %arg3[%c1, %c0_4], %4 {strides = array<i32>} : memref<8x128xf32, #tpu.memory_space<vmem>>, vector<2x128xf32>,
    %c2 = arith.constant 2 : index
    %c0_5 = arith.constant 0 : index
    %6 = vector.load %arg1[%c2, %c0_5] : memref<4x512xf32, #tpu.memory_space<vmem>>, vector<2x512xf32>
    %cst_6 = arith.constant dense<0.000000e+00> : vector<2x128xf32>
    %7 = tpu.matmul %6, %0, %cst_6 {dimension_numbers = #tpu.dot_dimension_numbers<[1], [0], [0], [1], [0, 0, 1, 1], [], []>, precision = #tpu.contract_precision<fp32>} : vector<2x512xf32>, vector<512x128xf32>, vector<2x128xf32> -> vector<2x128xf32>
    %cst_7 = arith.constant 0.000000e+00 : f32
    %8 = vector.broadcast %cst_7 : f32 to vector<2x128xf32>
    %9 = arith.maximumf %7, %8 : vector<2x128xf32>
    %c5 = arith.constant 5 : index
    %c0_8 = arith.constant 0 : index
    %10 = vector.load %arg3[%c5, %c0_8] : memref<8x128xf32, #tpu.memory_space<vmem>>, vector<2x128xf32>
    tpu.vector_store %arg3[%c5, %c0_8], %9 {strides = array<i32>} : memref<8x128xf32, #tpu.memory_space<vmem>>, vector<2x128xf32>,
    %cst_9 = arith.constant 0.000000e+00 : f32
    %11 = vector.broadcast %cst_9 : f32 to vector<1x128xf32>
    %c0_10 = arith.constant 0 : index
    %c0_11 = arith.constant 0 : index
    %12 = vector.load %arg3[%c0_10, %c0_11] : memref<8x128xf32, #tpu.memory_space<vmem>>, vector<1x128xf32>
    tpu.vector_store %arg3[%c0_10, %c0_11], %11 {strides = array<i32>} : memref<8x128xf32, #tpu.memory_space<vmem>>, vector<1x128xf32>,
    %c7 = arith.constant 7 : index
    %c0_12 = arith.constant 0 : index
    %13 = vector.load %arg3[%c7, %c0_12] : memref<8x128xf32, #tpu.memory_space<vmem>>, vector<1x128xf32>
    tpu.vector_store %arg3[%c7, %c0_12], %11 {strides = array<i32>} : memref<8x128xf32, #tpu.memory_space<vmem>>, vector<1x128xf32>,
    %cst_13 = arith.constant 0.000000e+00 : f32
    %14 = vector.broadcast %cst_13 : f32 to vector<2x128xf32>
    %c3 = arith.constant 3 : index
    %c0_14 = arith.constant 0 : index
    %15 = vector.load %arg3[%c3, %c0_14] : memref<8x128xf32, #tpu.memory_space<vmem>>, vector<2x128xf32>
    tpu.vector_store %arg3[%c3, %c0_14], %14 {strides = array<i32>} : memref<8x128xf32, #tpu.memory_space<vmem>>, vector<2x128xf32>,
    return
  }
  func.func @transform_0(%arg0: i32) -> (i32, i32) {
    %c0_i32 = arith.constant 0 : i32
    %c0_i32_0 = arith.constant 0 : i32
    return %arg0, %c0_i32 : i32, i32
  }
  func.func @transform_1(%arg0: i32) -> (i32, i32) {
    %c0_i32 = arith.constant 0 : i32
    %c0_i32_0 = arith.constant 0 : i32
    %c0_i32_1 = arith.constant 0 : i32
    return %c0_i32, %c0_i32_0 : i32, i32
  }
  func.func @transform_2(%arg0: i32) -> (i32, i32) {
    %c0_i32 = arith.constant 0 : i32
    %c0_i32_0 = arith.constant 0 : i32
    return %arg0, %c0_i32 : i32, i32
  }
}

</mosaic_0001>

<bundles_post_ra>
// kernel: tpu_custom_call.1
= control target key start
LH: loop header
LB: loop body
LE: loop exit
PB: predicated region body
PF: predicated region fallthrough
CT: control target
= control target key end

     0   :  { %7 = vsyncpa [#allocation3], 0  ;;  %s6937_s0 = inlined_call_operand.hbm [shape: f32[4,512], index: 0, kind: input, shape index: {}]   ;;  %s6938_s1 = inlined_call_operand.hbm [shape: f32[512,128], index: 1, kind: input, shape index: {}]   ;;  %s6939_s2 = inlined_call_operand.hbm [shape: f32[8,128], index: 2, kind: output, shape index: {}]  }
   0x1   :  { %8 = vsyncpa [#allocation6], 0 }
   0x2   :  { %9 = vsyncpa [#allocation4], 0  ;;  %s5285_s9 = smov [#allocation2]   ;;  %s5286_s11 = smov [#allocation5]  }
   0x3   :  { %s16_s10 = sshll.u32 %s5285_s9, 4  ;;  %s25_s12 = sshll.u32 %s5286_s11, 4  ;;  %s17_s10 = int_to_ptr.vmem [resolvable:$true] %s16_s10  ;;  %s5306_s12 = int_to_ptr.vmem [resolvable:$true] %s25_s12 }
   0x4   :  { %s5213_s15 = scalar_lea.hbm %s6937_s0, 256 }
   0x5   :  { %p5214_p0 = scmp.ne.s32.totalorder %s6937_s0, %s5213_s15  ;;  %p5217_p1 = scmp.lt.u32.totalorder %s5213_s15, %s6937_s0 }
   0x7   :  { %p5219_p2 = pnand %p5217_p1, %p5214_p0 }
   0x9   :  { %5222 = shalt.err (!%p5219_p2)
}
   0xa   :  { %s5223_s20 = scalar_lea.vmem %s17_s10, 256  ;;  %p5228_p4 = scmp.lt.s32.totalorder %s17_s10, %s17_s10 }
   0xb   :  { %p5224_p3 = scmp.ne.s32.totalorder %s17_s10, %s5223_s20  ;;  %p5229_p5 = scmp.lt.s32.totalorder %s5223_s20, %s5223_s20 }
   0xd   :  { %p5230_p6 = por %p5229_p5, %p5228_p4 }
   0xf   :  { %p5231_p7 = pnand %p5230_p6, %p5224_p3 }
  0x11   :  { %5234 = shalt.err (!%p5231_p7)
}
  0x12   :  { %19 = dma.hbm_to_vmem [thread:$0]  %s6937_s0, 256, %s17_s10, [#allocation3]  }
  0x13   :  { %s5235_s25 = scalar_lea.hbm %s6938_s1, 8192 }
  0x14   :  { %p5236_p8 = scmp.ne.s32.totalorder %s6938_s1, %s5235_s25  ;;  %p5239_p9 = scmp.lt.u32.totalorder %s5235_s25, %s6938_s1 }
  0x16   :  { %p5241_p10 = pnand %p5239_p9, %p5236_p8 }
  0x18   :  { %5244 = shalt.err (!%p5241_p10)
}
  0x19   :  { %s5245_s30 = scalar_lea.vmem %s5306_s12, 8192  ;;  %p5250_p12 = scmp.lt.s32.totalorder %s5306_s12, %s5306_s12 }
  0x1a   :  { %p5246_p11 = scmp.ne.s32.totalorder %s5306_s12, %s5245_s30  ;;  %p5251_p13 = scmp.lt.s32.totalorder %s5245_s30, %s5245_s30 }
  0x1c   :  { %p5252_p0 = por %p5251_p13, %p5250_p12 }
  0x1e   :  { %p5253_p1 = pnand %p5252_p0, %p5246_p11 }
  0x20   :  { %5256 = shalt.err (!%p5253_p1)
}
  0x21   :  { %s5287_s0 = smov 128   ;;  %s5288_s3 = smov 8  }
  0x22   :  { %31 = dma.hbm_to_vmem [thread:$0]  %s6938_s1, 8192, %s5306_s12, [#allocation6], %s5287_s0, %s5287_s0, %s5288_s3  }
  0x23   :  { %5279 = dma.done.wait [#allocation3], 256  }
  0x24   :  { %5280 = vsyncadd [#allocation3], 4294967040 }
  0x25   :  { %5281 = dma.done.wait [#allocation6], 8192  }
  0x26   :  { %5282 = vsyncadd [#allocation6], 4294959104  ;;  %v54_v0 = vld [vmem:[#allocation5 + $0x80] sm:$0xff]  ;;  %v55_v1 = vld [vmem:[#allocation5 + $0x88] sm:$0xff]  ;;  %s5290_s1 = smov [#allocation7]  }
  0x27   :  { %v38_v2 = vld [vmem:[#allocation5] sm:$0xff]  ;;  %v159_v3 = vand.u32 4294901760, %v54_v0  ;;  %v162_v4 = vand.u32 4294901760, %v55_v1  ;;  %v39_v5 = vld [vmem:[#allocation5 + $0x8] sm:$0xff]  ;;  %v56_v7 = vld [vmem:[#allocation5 + $0x90] sm:$0xff]  ;;  %s3585_s6 = sshll.u32 %s5290_s1, 4  ;;  %s3586_s6 = int_to_ptr.vmem [resolvable:$true] %s3585_s6 }
  0x28   :  { %v111_v6 = vand.u32 4294901760, %v38_v2  ;;  %v57_v8 = vld [vmem:[#allocation5 + $0x98] sm:$0xff]  ;;  %v114_v9 = vand.u32 4294901760, %v39_v5  ;;  %v165_v10 = vand.u32 4294901760, %v56_v7  ;;  %v40_v12 = vld [vmem:[#allocation5 + $0x10] sm:$0xff]  ;;  %v5337_v14 = vld [vmem:[#allocation5 + $0xa0] sm:$0xff]  ;;  %p5262_p3 = scmp.lt.s32.totalorder %s3586_s6, %s3586_s6 }
  0x29   :  { %v168_v11 = vand.u32 4294901760, %v57_v8  ;;  %v41_v13 = vld [vmem:[#allocation5 + $0x18] sm:$0xff]  ;;  %v5339_v15 = vpack.c.bf16 %v162_v4, %v159_v3  ;;  %v117_v16 = vand.u32 4294901760, %v40_v12  ;;  %v5341_v18 = vld [vmem:[#allocation5 + $0xa8] sm:$0xff]  ;;  %v171_v19 = vand.u32 4294901760, %v5337_v14  ;;  %v5344_v20 = vld [vmem:[#allocation5 + $0x20] sm:$0xff] }
  0x2a   :  { %v120_v17 = vand.u32 4294901760, %v41_v13  ;;  %v5346_v21 = vld [vmem:[#allocation5 + $0x28] sm:$0xff]  ;;  %v5348_v22 = vpack.c.bf16 %v114_v9, %v111_v6  ;;  %v174_v24 = vand.u32 4294901760, %v5341_v18  ;;  %v5353_v25 = vsub.f32 %v54_v0, %v159_v3  ;;  %v5355_v26 = vld [vmem:[#allocation5 + $0xb0] sm:$0xff]  ;;  %v5357_v27 = vld [vmem:[#allocation5 + $0xb8] sm:$0xff]  ;;  %s5257_s7 = scalar_lea.vmem %s3586_s6, 128 }
  0x2b   :  { %7123 = vst [vmem:[#allocation11_spill] sm:$0xff] %v5339_v15  ;;  %v5350_v23 = vpack.c.bf16 %v168_v11, %v165_v10  ;;  %4436 = vmatprep.subr.bf16.mxu0 %v5339_v15  ;;  %v5362_v29 = vsub.f32 %v55_v1, %v162_v4  ;;  %v123_v30 = vand.u32 4294901760, %v5344_v20  ;;  %v126_v31 = vand.u32 4294901760, %v5346_v21  ;;  %v5378_v36 = vld [vmem:[#allocation5 + $0x30] sm:$0xff]  ;;  %v5397_v45 = vld [vmem:[#allocation5 + $0x38] sm:$0xff]  ;;  %v5424_v58 = vld [vmem:[#allocation5 + $0xc0] sm:$0xff]  ;;  %p5258_p2 = scmp.ne.s32.totalorder %s3586_s6, %s5257_s7  ;;  %p5263_p4 = scmp.lt.s32.totalorder %s5257_s7, %s5257_s7 }
  0x2c   :  { %7124 = vst [vmem:[#allocation12_spill] sm:$0xff] %v5348_v22  ;;  %v5360_v28 = vpack.c.bf16 %v120_v17, %v117_v16  ;;  %4438 = vmatpush3.bf16.msra.mxu0 %v5348_v22  ;;  %v5371_v32 = vpack.c.bf16 %v174_v24, %v171_v19  ;;  %v6953_v33 = vand.u32 4294901760, %v5353_v25  ;;  %v5374_v34 = vsub.f32 %v38_v2, %v111_v6  ;;  %v5431_v63 = vld [vmem:[#allocation5 + $0xc8] sm:$0xff]  ;;  %v5445_v4 = vld [vmem:[#allocation5 + $0x40] sm:$0xff] }
  0x2d   :  { %7125 = vst [vmem:[#allocation13_spill] sm:$0xff] %v5350_v23  ;;  %v5376_v35 = vsub.f32 %v39_v5, %v114_v9  ;;  %4440 = vmatprep.subr.bf16.mxu0 %v5350_v23  ;;  %v6950_v37 = vand.u32 4294901760, %v5362_v29  ;;  %v5386_v38 = vpack.c.bf16 %v126_v31, %v123_v30  ;;  %v177_v39 = vand.u32 4294901760, %v5355_v26  ;;  %v5447_v5 = vld [vmem:[#allocation5 + $0x48] sm:$0xff]  ;;  %p5264_p5 = por %p5263_p4, %p5262_p3 }
  0x2e   :  { %7126 = vst [vmem:[#allocation14_spill] sm:$0xff] %v5360_v28  ;;  %7127 = vst [vmem:[#allocation15_spill] sm:$0xff] %v5371_v32  ;;  %v180_v40 = vand.u32 4294901760, %v5357_v27  ;;  %v338_v41 = vsub.f32 %v5353_v25, %v6953_v33  ;;  %v6949_v42 = vand.u32 4294901760, %v5374_v34  ;;  %v5395_v44 = vsub.f32 %v56_v7, %v165_v10 }
  0x2f   :  { %7128 = vst [vmem:[#allocation16_spill] sm:$0xff] %v5386_v38  ;;  %v6947_v43 = vand.u32 4294901760, %v5376_v35  ;;  %v345_v46 = vsub.f32 %v5362_v29, %v6950_v37  ;;  %v5408_v48 = vsub.f32 %v57_v8, %v168_v11  ;;  %v129_v49 = vand.u32 4294901760, %v5378_v36  ;;  %p5265_p6 = pnand %p5264_p5, %p5258_p2 }
  0x30   :  { %v5406_v47 = vpack.c.bf16 %v180_v40, %v177_v39  ;;  %4442 = vmatpush3.bf16.msra.mxu0 %v5360_v28  ;;  %v339_v50 = vand.u32 4294901760, %v338_v41  ;;  %v226_v51 = vsub.f32 %v5374_v34, %v6949_v42  ;;  %v6946_v53 = vand.u32 4294901760, %v5395_v44 }
  0x31   :  { %v233_v52 = vsub.f32 %v5376_v35, %v6947_v43  ;;  %4444 = vmatprep.subr.bf16.mxu0 %v5371_v32  ;;  %v346_v54 = vand.u32 4294901760, %v345_v46  ;;  %v6945_v55 = vand.u32 4294901760, %v5408_v48  ;;  %v132_v56 = vand.u32 4294901760, %v5397_v45 }
  0x32   :  { %7129 = vst [vmem:[#allocation17_spill] sm:$0xff] %v5406_v47  ;;  %v5422_v57 = vsub.f32 %v40_v12, %v117_v16  ;;  %v227_v59 = vand.u32 4294901760, %v226_v51  ;;  %v352_v61 = vsub.f32 %v5395_v44, %v6946_v53  ;;  %v5429_v62 = vsub.f32 %v41_v13, %v120_v17  ;;  %v5478_v51 = vld [vmem:[#allocation5 + $0xd8] sm:$0xff] }
  0x33   :  { %v234_v60 = vand.u32 4294901760, %v233_v52  ;;  %v5433_v0 = vpack.c.bf16 %v346_v54, %v339_v50  ;;  %v359_v1 = vsub.f32 %v5408_v48, %v6945_v55  ;;  %v5442_v2 = vpack.c.bf16 %v132_v56, %v129_v49  ;;  %v5476_v50 = vld [vmem:[#allocation5 + $0xd0] sm:$0xff]  ;;  %v5561_v55 = vld [vmem:[#allocation5 + $0xe8] sm:$0xff] }
  0x34   :  { %v6943_v3 = vand.u32 4294901760, %v5422_v57  ;;  %4446 = vmatpush3.bf16.msra.mxu0 %v5386_v38  ;;  %v353_v7 = vand.u32 4294901760, %v352_v61  ;;  %v6941_v8 = vand.u32 4294901760, %v5429_v62  ;;  %v183_v9 = vand.u32 4294901760, %v5424_v58 }
  0x35   :  { %7130 = vst [vmem:[#allocation18_spill] sm:$0xff] %v5433_v0  ;;  %7131 = vst [vmem:[#allocation19_spill] sm:$0xff] %v5442_v2  ;;  %v5450_v6 = vpack.c.bf16 %v234_v60, %v227_v59  ;;  %4468 = vmatprep.subr.bf16.mxu1 %v5433_v0  ;;  %4448 = vmatprep.subr.bf16.mxu0 %v5406_v47  ;;  %v360_v10 = vand.u32 4294901760, %v359_v1  ;;  %v186_v12 = vand.u32 4294901760, %v5431_v63  ;;  %v135_v41 = vand.u32 4294901760, %v5445_v4 }
  0x36   :  { %v240_v11 = vsub.f32 %v5422_v57, %v6943_v3  ;;  %v5463_v13 = vsub.f32 %v5337_v14, %v171_v19  ;;  %v247_v16 = vsub.f32 %v5429_v62, %v6941_v8  ;;  %v5472_v17 = vsub.f32 %v5341_v18, %v174_v24 }
  0x37   :  { %7132 = vst [vmem:[#allocation20_spill] sm:$0xff] %v5450_v6  ;;  %4470 = vmatpush3.bf16.msra.mxu1 %v5450_v6  ;;  %v138_v46 = vand.u32 4294901760, %v5447_v5  ;;  %v5480_v14 = vpack.c.bf16 %v360_v10, %v353_v7  ;;  %v5486_v52 = vpack.c.bf16 %v186_v12, %v183_v9  ;;  %v5500_v60 = vsub.f32 %v5344_v20, %v123_v30 }
  0x38   :  { %v241_v19 = vand.u32 4294901760, %v240_v11  ;;  %v6940_v18 = vand.u32 4294901760, %v5463_v13  ;;  %4450 = vmatpush3.bf16.msra.mxu0 %v5442_v2  ;;  %v248_v24 = vand.u32 4294901760, %v247_v16  ;;  %v6942_v54 = vand.u32 4294901760, %v5472_v17  ;;  %v5514_v11 = vld [vmem:[#allocation5 + $0x50] sm:$0xff] }
  0x39   :  { %7133 = vst [vmem:[#allocation21_spill] sm:$0xff] %v5480_v14  ;;  %7134 = vst [vmem:[#allocation22_spill] sm:$0xff] %v5486_v52  ;;  %v5495_v59 = vpack.c.bf16 %v138_v46, %v135_v41  ;;  %4472 = vmatprep.subr.bf16.mxu1 %v5480_v14  ;;  %4452 = vmatprep.subr.bf16.mxu0 %v5486_v52  ;;  %v5510_v1 = vsub.f32 %v5346_v21, %v126_v31  ;;  %v6962_v7 = vand.u32 4294901760, %v5476_v50  ;;  %v5527_v21 = vld [vmem:[#allocation5 + $0x58] sm:$0xff] }
  0x3a   :  { %v366_v61 = vsub.f32 %v5463_v13, %v6940_v18  ;;  %v6958_v10 = vand.u32 4294901760, %v5478_v51  ;;  %v5516_v20 = vpack.c.bf16 %v248_v24, %v241_v19  ;;  %v373_v30 = vsub.f32 %v5472_v17, %v6942_v54 }
  0x3b   :  { %7135 = vst [vmem:[#allocation23_spill] sm:$0xff] %v5495_v59  ;;  %v6944_v16 = vand.u32 4294901760, %v5500_v60  ;;  %v5525_v18 = vsub.f32 %v5355_v26, %v177_v39  ;;  %v6948_v8 = vand.u32 4294901760, %v5510_v1  ;;  %v5539_v24 = vsub.f32 %v5357_v27, %v180_v40 }
  0x3c   :  { %7136 = vst [vmem:[#allocation24_spill] sm:$0xff] %v5516_v20  ;;  %v367_v31 = vand.u32 4294901760, %v366_v61  ;;  %v5534_v19 = vpack.c.bf16 %v6958_v10, %v6962_v7  ;;  %4474 = vmatpush3.bf16.msra.mxu1 %v5516_v20  ;;  %v374_v26 = vand.u32 4294901760, %v373_v30  ;;  %4454 = vmatpush3.bf16.msra.mxu0 %v5495_v59  ;;  %v6955_v54 = vand.u32 4294901760, %v5514_v11 }
  0x3d   :  { %v254_v39 = vsub.f32 %v5500_v60, %v6944_v16  ;;  %v6952_v61 = vand.u32 4294901760, %v5525_v18  ;;  %v261_v3 = vsub.f32 %v5510_v1, %v6948_v8  ;;  %v6951_v27 = vand.u32 4294901760, %v5539_v24  ;;  %v5559_v16 = vld [vmem:[#allocation5 + $0xe0] sm:$0xff] }
  0x3e   :  { %7137 = vst [vmem:[#allocation25_spill] sm:$0xff] %v5534_v19  ;;  %4456 = vmatprep.subr.bf16.mxu0 %v5534_v19  ;;  %v6954_v40 = vand.u32 4294901760, %v5527_v21  ;;  %v5557_v30 = vsub.f32 %v5378_v36, %v129_v49  ;;  %v5563_v53 = vpack.c.bf16 %v374_v26, %v367_v31  ;;  %v5571_v42 = vsub.f32 %v5397_v45, %v132_v56  ;;  %v5583_v26 = vld [vmem:[#allocation5 + $0x60] sm:$0xff] }
  0x3f   :  { %v255_v43 = vand.u32 4294901760, %v254_v39  ;;  %v380_v8 = vsub.f32 %v5525_v18, %v6952_v61  ;;  %v262_v37 = vand.u32 4294901760, %v261_v3  ;;  %v387_v36 = vsub.f32 %v5539_v24, %v6951_v27  ;;  %v5589_v27 = vld [vmem:[#allocation5 + $0x68] sm:$0xff] }
  0x40   :  { %7138 = vst [vmem:[#allocation26_spill] sm:$0xff] %v5563_v53  ;;  %v5580_v49 = vpack.c.bf16 %v6954_v40, %v6955_v54  ;;  %v6956_v31 = vand.u32 4294901760, %v5557_v30  ;;  %4476 = vmatprep.subr.bf16.mxu1 %v5563_v53  ;;  %v6957_v45 = vand.u32 4294901760, %v5571_v42  ;;  %v6960_v56 = vand.u32 4294901760, %v5559_v16 }
  0x41   :  { %v381_v39 = vand.u32 4294901760, %v380_v8  ;;  %v6959_v3 = vand.u32 4294901760, %v5561_v55  ;;  %v5591_v61 = vpack.c.bf16 %v262_v37, %v255_v43  ;;  %v388_v33 = vand.u32 4294901760, %v387_v36 }
  0x42   :  { %7139 = vst [vmem:[#allocation27_spill] sm:$0xff] %v5580_v49  ;;  %4458 = vmatpush3.bf16.msra.mxu0 %v5580_v49  ;;  %v268_v40 = vsub.f32 %v5557_v30, %v6956_v31  ;;  %v5600_v8 = vsub.f32 %v5424_v58, %v183_v9  ;;  %v275_v54 = vsub.f32 %v5571_v42, %v6957_v45  ;;  %v6965_v36 = vand.u32 4294901760, %v5583_v26  ;;  %v5617_v31 = vld [vmem:[#allocation5 + $0xf0] sm:$0xff]  ;;  %v5619_v58 = vld [vmem:[#allocation5 + $0xf8] sm:$0xff] }
  0x43   :  { %7140 = vst [vmem:[#allocation28_spill] sm:$0xff] %v5591_v61  ;;  %v5609_v37 = vpack.c.bf16 %v6959_v3, %v6960_v56  ;;  %v5614_v43 = vsub.f32 %v5431_v63, %v186_v12  ;;  %4478 = vmatpush3.bf16.msra.mxu1 %v5591_v61  ;;  %v5622_v9 = vpack.c.bf16 %v388_v33, %v381_v39  ;;  %v6964_v3 = vand.u32 4294901760, %v5589_v27  ;;  %v5650_v39 = vld [vmem:[#allocation5 + $0x70] sm:$0xff] }
  0x44   :  { %v269_v45 = vand.u32 4294901760, %v268_v40  ;;  %v6961_v10 = vand.u32 4294901760, %v5600_v8  ;;  %v276_v56 = vand.u32 4294901760, %v275_v54  ;;  %v5631_v12 = vsub.f32 %v5445_v4, %v135_v41 }
  0x45   :  { %7141 = vst [vmem:[#allocation29_spill] sm:$0xff] %v5609_v37  ;;  %7142 = vst [vmem:[#allocation30_spill] sm:$0xff] %v5622_v9  ;;  %4460 = vmatprep.subr.bf16.mxu0 %v5609_v37  ;;  %v6966_v63 = vand.u32 4294901760, %v5614_v43  ;;  %v5636_v33 = vsub.f32 %v5447_v5, %v138_v46  ;;  %4480 = vmatprep.subr.bf16.mxu1 %v5622_v9  ;;  %v5646_v40 = vpack.c.bf16 %v6964_v3, %v6965_v36  ;;  %v5659_v9 = vld [vmem:[#allocation5 + $0x78] sm:$0xff] }
  0x46   :  { %v394_v54 = vsub.f32 %v5600_v8, %v6961_v10  ;;  %v6969_v4 = vand.u32 4294901760, %v5617_v31  ;;  %v6968_v41 = vand.u32 4294901760, %v5619_v58  ;;  %v5652_v5 = vpack.c.bf16 %v276_v56, %v269_v45 }
  0x47   :  { %7143 = vst [vmem:[#allocation31_spill] sm:$0xff] %v5646_v40  ;;  %v401_v46 = vsub.f32 %v5614_v43, %v6966_v63  ;;  %v6971_v10 = vand.u32 4294901760, %v5631_v12  ;;  %4462 = vmatpush3.bf16.msra.mxu0 %v5646_v40  ;;  %v7146_v45 = vand.u32 4294901760, %v5476_v50  ;;  %v7147_v63 = vand.u32 4294901760, %v5478_v51 }
  0x48   :  { %7144 = vst [vmem:[#allocation32_spill] sm:$0xff] %v5652_v5  ;;  %v395_v3 = vand.u32 4294901760, %v394_v54  ;;  %v5666_v36 = vpack.c.bf16 %v6968_v41, %v6969_v4  ;;  %4482 = vmatpush3.bf16.msra.mxu1 %v5652_v5  ;;  %v7148_v41 = vand.u32 4294901760, %v5636_v33  ;;  %v7151_v53 = vand.u32 4294901760, %v5527_v21 }
  0x49   :  { %v5671_v56 = vsub.f32 %v5476_v50, %v7146_v45  ;;  %v5676_v7 = vsub.f32 %v5478_v51, %v7147_v63  ;;  %v402_v54 = vand.u32 4294901760, %v401_v46  ;;  %v282_v61 = vsub.f32 %v5631_v12, %v6971_v10  ;;  %v102_v10 = vld [vmem:[#allocation2] sm:$0x33] }
  0x4a   :  { %7145 = vst [vmem:[#allocation33_spill] sm:$0xff] %v5666_v36  ;;  %v289_v4 = vsub.f32 %v5636_v33, %v7148_v41  ;;  %4464 = vmatprep.subr.bf16.mxu0 %v5666_v36  ;;  %v7149_v46 = vand.u32 4294901760, %v5514_v11  ;;  %v5700_v14 = vsub.f32 %v5527_v21, %v7151_v53 }
  0x4b   :  { %v6976_v50 = vand.u32 4294901760, %v5671_v56  ;;  %v5695_v5 = vpack.c.bf16 %v402_v54, %v395_v3  ;;  %v283_v20 = vand.u32 4294901760, %v282_v61  ;;  %v7152_v63 = vand.u32 4294901760, %v5676_v7 }
  0x4c   :  { %v5693_v45 = vsub.f32 %v5514_v11, %v7149_v46  ;;  %v290_v41 = vand.u32 4294901760, %v289_v4  ;;  %v7153_v11 = vand.u32 4294901760, %v5650_v39  ;;  %v7154_v3 = vand.u32 4294901760, %v5659_v9 }
  0x4d   :  { %7150 = vst [vmem:[#allocation34_spill] sm:$0xff] %v5695_v5  ;;  %v408_v51 = vsub.f32 %v5671_v56, %v6976_v50  ;;  %v415_v6 = vsub.f32 %v5676_v7, %v7152_v63  ;;  %4484 = vmatprep.subr.bf16.mxu1 %v5695_v5  ;;  %v6981_v21 = vand.u32 4294901760, %v5700_v14  ;;  %v106_v4 = vcombine.high %v102_v10, %v102_v10 }
  0x4e   :  { %v5712_v54 = vpack.c.bf16 %v7154_v3, %v7153_v11  ;;  %v6978_v61 = vand.u32 4294901760, %v5693_v45  ;;  %v5716_v53 = vpack.c.bf16 %v290_v41, %v283_v20  ;;  %v5719_v46 = vand.u32 4294901760, %v102_v10 }
  0x4f   :  { %v409_v50 = vand.u32 4294901760, %v408_v51  ;;  %v416_v0 = vand.u32 4294901760, %v415_v6  ;;  %v7157_v11 = vand.u32 4294901760, %v5559_v16  ;;  %v303_v20 = vsub.f32 %v5700_v14, %v6981_v21 }
  0x50   :  { %7155 = vst [vmem:[#allocation35_spill] sm:$0xff] %v5712_v54  ;;  %7156 = vst [vmem:[#allocation36_spill] sm:$0xff] %v5716_v53  ;;  %4466 = vmatpush3.bf16.msra.mxu0 %v5712_v54  ;;  %v296_v63 = vsub.f32 %v5693_v45, %v6978_v61  ;;  %4486 = vmatpush3.bf16.msra.mxu1 %v5716_v53  ;;  %v5734_v41 = vand.u32 4294901760, %v106_v4  ;;  %v7159_v6 = vand.u32 4294901760, %v5561_v55 }
  0x51   :  { %v5728_v3 = vsub.f32 %v5559_v16, %v7157_v11  ;;  %v5743_v61 = vpack.c.bf16 %v5362_v29, %v5353_v25  ;;  %v5745_v5 = vpack.c.bf16 %v416_v0, %v409_v50  ;;  %v5749_v53 = vsub.f32 %v102_v10, %v5719_v46 }
  0x52   :  { %7158 = vst [vmem:[#allocation37_spill] sm:$0xff] %v5734_v41  ;;  %v5739_v51 = vsub.f32 %v5561_v55, %v7159_v6  ;;  %v297_v16 = vand.u32 4294901760, %v296_v63  ;;  %v304_v21 = vand.u32 4294901760, %v303_v20  ;;  %v5752_v54 = vsub.f32 %v106_v4, %v5734_v41  ;;  %447 = vmatprep.mubr.f32.mxu1 %v5734_v41 }
  0x53   :  { %7160 = vst [vmem:[#allocation38_spill] sm:$0xff] %v5743_v61  ;;  %7161 = vst [vmem:[#allocation39_spill] sm:$0xff] %v5745_v5  ;;  %v6986_v11 = vand.u32 4294901760, %v5728_v3  ;;  %4500 = vmatprep.subr.bf16.mxu0 %v5743_v61  ;;  %v7163_v55 = vand.u32 4294901760, %v5583_v26  ;;  %4488 = vmatprep.subr.bf16.mxu1 %v5745_v5  ;;  %v7164_v50 = vand.u32 4294901760, %v5589_v27  ;;  %v5774_v63 = vpack.c.bf16 %v5376_v35, %v5374_v34 }
  0x54   :  { %7162 = vst [vmem:[#allocation40_spill] sm:$0xff] %v5749_v53  ;;  %v6989_v36 = vand.u32 4294901760, %v5739_v51  ;;  %v6993_v20 = vand.u32 4294901760, %v5752_v54  ;;  %v7167_v61 = vand.u32 4294901760, %v5749_v53  ;;  %v7168_v5 = vand.u32 4294901760, %v5617_v31 }
  0x55   :  { %v5759_v6 = vsub.f32 %v5583_v26, %v7163_v55  ;;  %v422_v0 = vsub.f32 %v5728_v3, %v6986_v11  ;;  %v5770_v4 = vsub.f32 %v5589_v27, %v7164_v50  ;;  %7165 = vst [vmem:[#allocation41_spill] sm:$0xff] %v5774_v63  ;;  %v5776_v26 = vpack.c.bf16 %v304_v21, %v297_v16 }
  0x56   :  { %v429_v55 = vsub.f32 %v5739_v51, %v6989_v36  ;;  %v215_v27 = vsub.f32 %v5749_v53, %v7167_v61  ;;  %v5790_v21 = vsub.f32 %v5617_v31, %v7168_v5  ;;  %v209_v16 = vsub.f32 %v5752_v54, %v6993_v20 }
  0x57   :  { %7166 = vst [vmem:[#allocation42_spill] sm:$0xff] %v5776_v26  ;;  %v6996_v11 = vand.u32 4294901760, %v5759_v6  ;;  %v423_v10 = vand.u32 4294901760, %v422_v0  ;;  %4490 = vmatpush3.bf16.msra.mxu1 %v5776_v26  ;;  %v7169_v61 = vand.u32 4294901760, %v5619_v58  ;;  %v7170_v31 = vand.u32 4294901760, %v5770_v4 }
  0x58   :  { %v430_v36 = vand.u32 4294901760, %v429_v55  ;;  %v216_v40 = vand.u32 4294901760, %v215_v27  ;;  %v7006_v26 = vand.u32 4294901760, %v5790_v21  ;;  %v5810_v20 = vpack.c.bf16 %v5408_v48, %v5395_v44 }
  0x59   :  { %v310_v0 = vsub.f32 %v5759_v6, %v6996_v11  ;;  %v5802_v50 = vsub.f32 %v5619_v58, %v7169_v61  ;;  %v317_v5 = vsub.f32 %v5770_v4, %v7170_v31  ;;  %v210_v55 = vand.u32 4294901760, %v209_v16 }
  0x5a   :  { %7171 = vst [vmem:[#allocation43_spill] sm:$0xff] %v5810_v20  ;;  %v5812_v41 = vpack.c.bf16 %v430_v36, %v423_v10  ;;  %v436_v58 = vsub.f32 %v5790_v21, %v7006_v26  ;;  %v7173_v27 = vand.u32 4294901760, %v5650_v39  ;;  %v7174_v31 = vand.u32 4294901760, %v5659_v9 }
  0x5b   :  { %v311_v11 = vand.u32 4294901760, %v310_v0  ;;  %v7005_v37 = vand.u32 4294901760, %v5802_v50  ;;  %v318_v53 = vand.u32 4294901760, %v317_v5  ;;  %211 = vmatprep.mubr.f32.mxu0 %v210_v55  ;;  %v7188_v26 = vand.u32 4294901760, %v5395_v44 }
  0x5c   :  { %7172 = vst [vmem:[#allocation44_spill] sm:$0xff] %v5812_v41  ;;  %v5821_v61 = vsub.f32 %v5650_v39, %v7173_v27  ;;  %v5826_v49 = vsub.f32 %v5659_v9, %v7174_v31  ;;  %4492 = vmatprep.subr.bf16.mxu1 %v5812_v41  ;;  %217 = vmatmul.mubr.f32.vlgmr.msra.gmra.mrb[0].mxu0 %v216_v40  ;;  %v437_v16 = vand.u32 4294901760, %v436_v58  ;;  %v7198_v44 = vand.u32 4294901760, %v5510_v1  ;;  %v6127_v41 = vld [vmem:[#allocation5 + $0x1c0] sm:$0xff] }
  0x5d   :  { %v443_v36 = vsub.f32 %v5802_v50, %v7005_v37  ;;  %v5832_v10 = vpack.c.bf16 %v318_v53, %v311_v11  ;;  %4502 = vmatpush3.bf16.msra.mxu0 %v5774_v63  ;;  %v5839_v9 = vpack.c.bf16 %v5429_v62, %v5422_v57  ;;  %584 = vmatprep.mubr.f32.mxu0 %v5752_v54 }
  0x5e   :  { %v7004_v0 = vand.u32 4294901760, %v5821_v61  ;;  %v7003_v39 = vand.u32 4294901760, %v5826_v49  ;;  %4504 = vmatprep.subr.bf16.mxu0 %v5810_v20  ;;  %v5852_v11 = vpack.c.bf16 %v5472_v17, %v5463_v13  ;;  %v5860_v31 = vpack.c.bf16 %v5510_v1, %v5500_v60 }
  0x5f   :  { %7175 = vst [vmem:[#allocation45_spill] sm:$0xff] %v5832_v10  ;;  %v444_v5 = vand.u32 4294901760, %v443_v36  ;;  %7176 = vst [vmem:[#allocation46_spill] sm:$0xff] %v5839_v9  ;;  %4494 = vmatpush3.bf16.msra.mxu1 %v5832_v10  ;;  %v5864_v36 = vpack.c.bf16 %v5539_v24, %v5525_v18 }
  0x60   :  { %v324_v40 = vsub.f32 %v5821_v61, %v7004_v0  ;;  %v331_v53 = vsub.f32 %v5826_v49, %v7003_v39  ;;  %7177 = vst [vmem:[#allocation47_spill] sm:$0xff] %v5852_v11  ;;  %7179 = vst [vmem:[#allocation49_spill] sm:$0xff] %v5860_v31  ;;  %v7181_v39 = vand.u32 4294901760, %v5353_v25  ;;  %v7182_v0 = vand.u32 4294901760, %v5362_v29 }
  0x61   :  { %v5854_v55 = vpack.c.bf16 %v444_v5, %v437_v16  ;;  %4506 = vmatpush3.bf16.msra.mxu0 %v5839_v9  ;;  %7180 = vst [vmem:[#allocation50_spill] sm:$0xff] %v5864_v36  ;;  %v7189_v9 = vand.u32 4294901760, %v5408_v48  ;;  %v7191_v25 = vand.u32 4294901760, %v5422_v57  ;;  %v7192_v29 = vand.u32 4294901760, %v5429_v62 }
  0x62   :  { %v325_v58 = vand.u32 4294901760, %v324_v40  ;;  %v332_v27 = vand.u32 4294901760, %v331_v53  ;;  %v5870_v16 = vpack.c.bf16 %v7182_v0, %v7181_v39  ;;  %4508 = vmatprep.subr.bf16.mxu0 %v5852_v11  ;;  %v7185_v40 = vand.u32 4294901760, %v5374_v34 }
  0x63   :  { %7178 = vst [vmem:[#allocation48_spill] sm:$0xff] %v5854_v55  ;;  %4496 = vmatprep.subr.bf16.mxu1 %v5854_v55  ;;  %v7186_v53 = vand.u32 4294901760, %v5376_v35  ;;  %v5885_v55 = vpack.c.bf16 %v7189_v9, %v7188_v26  ;;  %v5891_v0 = vpack.c.bf16 %v7192_v29, %v7191_v25  ;;  %v7194_v39 = vand.u32 4294901760, %v5463_v13 }
  0x64   :  { %7183 = vst [vmem:[#allocation51_spill] sm:$0xff] %v5870_v16  ;;  %v5872_v5 = vpack.c.bf16 %v332_v27, %v325_v58  ;;  %v7195_v34 = vand.u32 4294901760, %v5472_v17  ;;  %v7197_v35 = vand.u32 4294901760, %v5500_v60  ;;  %v7200_v48 = vand.u32 4294901760, %v5525_v18 }
  0x65   :  { %v5879_v37 = vpack.c.bf16 %v7186_v53, %v7185_v40  ;;  %7190 = vst [vmem:[#allocation54_spill] sm:$0xff] %v5885_v55  ;;  %7193 = vst [vmem:[#allocation55_spill] sm:$0xff] %v5891_v0  ;;  %v7201_v57 = vand.u32 4294901760, %v5539_v24  ;;  %v7203_v62 = vand.u32 4294901760, %v5557_v30  ;;  %v7204_v13 = vand.u32 4294901760, %v5571_v42  ;;  %4510 = vmatpush3.bf16.msra.mxu0 %v5860_v31  ;;  %v74_v31 = vld [vmem:[#allocation5 + $0x120] sm:$0xff] }
  0x66   :  { %7184 = vst [vmem:[#allocation52_spill] sm:$0xff] %v5872_v5  ;;  %v5897_v58 = vpack.c.bf16 %v7195_v34, %v7194_v39  ;;  %v5903_v27 = vpack.c.bf16 %v7198_v44, %v7197_v35  ;;  %4498 = vmatpush3.bf16.msra.mxu1 %v5872_v5  ;;  %v7206_v17 = vand.u32 4294901760, %v5600_v8  ;;  %v7207_v60 = vand.u32 4294901760, %v5614_v43  ;;  %4512 = vmatprep.subr.bf16.mxu0 %v5864_v36  ;;  %v7222_v39 = vld [vmem:[#allocation27_spill] sm:$0xff]  ;;  %v7223_v34 = vld [vmem:[#allocation40_spill] sm:$0xff]  ;;  %v7224_v35 = vld [vmem:[#allocation29_spill] sm:$0xff] }
  0x67   :  { %7187 = vst [vmem:[#allocation53_spill] sm:$0xff] %v5879_v37  ;;  %v5909_v26 = vpack.c.bf16 %v7201_v57, %v7200_v48  ;;  %v5915_v9 = vpack.c.bf16 %v7204_v13, %v7203_v62  ;;  %v7209_v18 = vand.u32 4294901760, %v5631_v12  ;;  %v7210_v24 = vand.u32 4294901760, %v5636_v33  ;;  %4532 = vmatprep.subr.bf16.mxu1 %v5339_v15  ;;  %v86_v44 = vld [vmem:[#allocation5 + $0x180] sm:$0xff]  ;;  %v87_v48 = vld [vmem:[#allocation5 + $0x188] sm:$0xff]  ;;  %v7225_v57 = vld [vmem:[#allocation37_spill] sm:$0xff] }
  0x68   :  { %7196 = vst [vmem:[#allocation56_spill] sm:$0xff] %v5897_v58  ;;  %7199 = vst [vmem:[#allocation57_spill] sm:$0xff] %v5903_v27  ;;  %v5922_v1 = vpack.c.bf16 %v7207_v60, %v7206_v17  ;;  %v5934_v53 = vpack.c.bf16 %v5571_v42, %v5557_v30  ;;  %v5939_v25 = vpack.c.bf16 %v5614_v43, %v5600_v8  ;;  %v7214_v29 = vand.u32 4294901760, %v5752_v54  ;;  %v7226_v62 = vld [vmem:[#allocation31_spill] sm:$0xff]  ;;  %v7227_v60 = vld [vmem:[#allocation33_spill] sm:$0xff] }
  0x69   :  { %7202 = vst [vmem:[#allocation58_spill] sm:$0xff] %v5909_v26  ;;  %7205 = vst [vmem:[#allocation59_spill] sm:$0xff] %v5915_v9  ;;  %v5928_v40 = vpack.c.bf16 %v7210_v24, %v7209_v18  ;;  %449 = vmatmul.mubr.f32.vlgmr.msra.gmra.mrb[0].mxu1 %v5719_v46  ;;  %v5949_v42 = vpack.c.bf16 %v5636_v33, %v5631_v12  ;;  %v5954_v30 = vpack.c.bf16 %v5676_v7, %v5671_v56  ;;  %v70_v18 = vld [vmem:[#allocation5 + $0x100] sm:$0xff]  ;;  %v71_v24 = vld [vmem:[#allocation5 + $0x108] sm:$0xff] }
  0x6a   :  { %7208 = vst [vmem:[#allocation60_spill] sm:$0xff] %v5922_v1  ;;  %7212 = vst [vmem:[#allocation62_spill] sm:$0xff] %v5934_v53  ;;  %4534 = vmatpush3.bf16.msra.mxu1 %v5348_v22  ;;  %691 = vmatprep.mubr.f32.mxu1 %v7214_v29  ;;  %v5961_v8 = vpack.c.bf16 %v5700_v14, %v5693_v45  ;;  %v5966_v43 = vpack.c.bf16 %v5739_v51, %v5728_v3  ;;  %v1021_v13 = vand.u32 4294901760, %v86_v44  ;;  %v88_v29 = vld [vmem:[#allocation5 + $0x190] sm:$0xff] }
  0x6b   :  { %7211 = vst [vmem:[#allocation61_spill] sm:$0xff] %v5928_v40  ;;  %7213 = vst [vmem:[#allocation63_spill] sm:$0xff] %v5939_v25  ;;  %4536 = vmatprep.subr.bf16.mxu1 %v5350_v23  ;;  %4514 = vmatpush3.bf16.msra.mxu0 %v5934_v53  ;;  %v5973_v12 = vpack.c.bf16 %v5770_v4, %v5759_v6  ;;  %v5978_v33 = vpack.c.bf16 %v5802_v50, %v5790_v21  ;;  %v1024_v17 = vand.u32 4294901760, %v87_v48 }
  0x6c   :  { %7215 = vst [vmem:[#allocation64_spill] sm:$0xff] %v5949_v42  ;;  %4516 = vmatprep.subr.bf16.mxu0 %v5939_v25  ;;  %7216 = vst [vmem:[#allocation65_spill] sm:$0xff] %v5954_v30  ;;  %v5985_v54 = vpack.c.bf16 %v5826_v49, %v5821_v61  ;;  %v6016_v25 = vld [vmem:[#allocation2 + $0x8] sm:$0x33] }
  0x6d   :  { %7217 = vst [vmem:[#allocation66_spill] sm:$0xff] %v5961_v8  ;;  %7218 = vst [vmem:[#allocation67_spill] sm:$0xff] %v5966_v43 }
  0x6e   :  { %4538 = vmatpush3.bf16.msra.mxu1 %v5360_v28  ;;  %7219 = vst [vmem:[#allocation68_spill] sm:$0xff] %v5973_v12  ;;  %7220 = vst [vmem:[#allocation69_spill] sm:$0xff] %v5978_v33 }
  0x6f   :  { %4540 = vmatprep.subr.bf16.mxu1 %v5371_v32  ;;  %4518 = vmatpush3.bf16.msra.mxu0 %v5949_v42  ;;  %7221 = vst [vmem:[#allocation70_spill] sm:$0xff] %v5985_v54  ;;  %v73_v42 = vld [vmem:[#allocation5 + $0x118] sm:$0xff] }
  0x70   :  { %4520 = vmatprep.subr.bf16.mxu0 %v5954_v30  ;;  %v72_v30 = vld [vmem:[#allocation5 + $0x110] sm:$0xff] }
  0x72   :  { %4542 = vmatpush3.bf16.msra.mxu1 %v5386_v38 }
  0x73   :  { %4544 = vmatprep.subr.bf16.mxu1 %v5406_v47  ;;  %4522 = vmatpush3.bf16.msra.mxu0 %v5961_v8 }
  0x74   :  { %4524 = vmatprep.subr.bf16.mxu0 %v5966_v43  ;;  %v1027_v43 = vand.u32 4294901760, %v88_v29 }
  0x76   :  { %4546 = vmatpush3.bf16.msra.mxu1 %v5442_v2 }
  0x77   :  { %4548 = vmatprep.subr.bf16.mxu1 %v5486_v52  ;;  %4526 = vmatpush3.bf16.msra.mxu0 %v5973_v12  ;;  %v6005_v12 = vsub.f32 %v87_v48, %v1024_v17  ;;  %v7233_v48 = vand.u32 4294901760, %v5693_v45  ;;  %v91_v45 = vld [vmem:[#allocation5 + $0x1a8] sm:$0xff] }
  0x78   :  { %4528 = vmatprep.subr.bf16.mxu0 %v5978_v33  ;;  %v6003_v33 = vsub.f32 %v86_v44, %v1021_v13  ;;  %v7232_v44 = vand.u32 4294901760, %v7223_v34 }
  0x7a   :  { %4550 = vmatpush3.bf16.msra.mxu1 %v5495_v59 }
  0x7b   :  { %4552 = vmatprep.subr.bf16.mxu1 %v5534_v19  ;;  %4530 = vmatpush3.bf16.msra.mxu0 %v5985_v54  ;;  %v976_v54 = vand.u32 4294901760, %v71_v24 }
  0x7c   :  { %4564 = vmatprep.subr.bf16.mxu0 %v5870_v16  ;;  %v973_v16 = vand.u32 4294901760, %v70_v18 }
  0x7e   :  { %4554 = vmatpush3.bf16.msra.mxu1 %v7222_v39  ;;  %587 = vmatmul.mubr.f32.vlgmr.msra.gmra.mrb[2].mxu0 %v7223_v34 }
  0x7f   :  { %4556 = vmatprep.subr.bf16.mxu1 %v7224_v35  ;;  %4566 = vmatpush3.bf16.msra.mxu0 %v5879_v37  ;;  %v7228_v37 = vld [vmem:[#allocation35_spill] sm:$0xff] }
  0x80   :  { %4568 = vmatprep.subr.bf16.mxu0 %v5885_v55  ;;  %861 = vmatprep.mubr.f32.mxu0 %v7225_v57  ;;  %v89_v55 = vld [vmem:[#allocation5 + $0x198] sm:$0xff] }
  0x81   :  { %v1030_v34 = vand.u32 4294901760, %v89_v55 }
  0x82   :  { %4558 = vmatpush3.bf16.msra.mxu1 %v7226_v62 }
  0x83   :  { %4560 = vmatprep.subr.bf16.mxu1 %v7227_v60  ;;  %4570 = vmatpush3.bf16.msra.mxu0 %v5891_v0  ;;  %v7229_v0 = vand.u32 4294901760, %v5671_v56  ;;  %v7237_v56 = vand.u32 4294901760, %v5739_v51  ;;  %v6042_v51 = vsub.f32 %v70_v18, %v973_v16  ;;  %v7243_v18 = vand.u32 4294901760, %v5802_v50 }
  0x84   :  { %4572 = vmatprep.subr.bf16.mxu0 %v5897_v58  ;;  %v7230_v58 = vand.u32 4294901760, %v5676_v7  ;;  %v6069_v5 = vsub.f32 %v89_v55, %v1030_v34  ;;  %v7250_v50 = vand.u32 4294901760, %v6003_v33  ;;  %v6084_v55 = vld [vmem:[#allocation5 + $0x1b8] sm:$0xff] }
  0x85   :  { %v7256_v10 = vand.u32 4294901760, %v6042_v51 }
  0x86   :  { %4562 = vmatpush3.bf16.msra.mxu1 %v7228_v37  ;;  %v6014_v8 = vpack.c.bf16 %v7230_v58, %v7229_v0  ;;  %v7239_v0 = vand.u32 4294901760, %v5759_v6  ;;  %v7240_v58 = vand.u32 4294901760, %v5770_v4  ;;  %v979_v6 = vand.u32 4294901760, %v72_v30 }
  0x87   :  { %4596 = vmatprep.subr.bf16.mxu1 %v5339_v15  ;;  %4574 = vmatpush3.bf16.msra.mxu0 %v5903_v27  ;;  %v7234_v27 = vand.u32 4294901760, %v5700_v14  ;;  %v90_v14 = vld [vmem:[#allocation5 + $0x1a0] sm:$0xff]  ;;  %v982_v4 = vand.u32 4294901760, %v73_v42 }
  0x88   :  { %4576 = vmatprep.subr.bf16.mxu0 %v5909_v26  ;;  %7231 = vst [vmem:[#allocation40_spill] sm:$0xff] %v6014_v8  ;;  %v7236_v26 = vand.u32 4294901760, %v5728_v3  ;;  %v6036_v36 = vpack.c.bf16 %v7240_v58, %v7239_v0  ;;  %v7246_v0 = vand.u32 4294901760, %v5826_v49  ;;  %v6065_v3 = vpack.c.bf16 %v1024_v17, %v1021_v13  ;;  %v6082_v17 = vld [vmem:[#allocation5 + $0x1b0] sm:$0xff] }
  0x89   :  { %695 = vmatmul.mubr.f32.vlgmr.msra.gmra.mrb[2].mxu1 %v7232_v44  ;;  %v6024_v53 = vpack.c.bf16 %v7234_v27, %v7233_v48  ;;  %v6048_v44 = vsub.f32 %v88_v29, %v1027_v43  ;;  %v7242_v48 = vand.u32 4294901760, %v5790_v21  ;;  %v6067_v29 = vpack.c.bf16 %v976_v54, %v973_v16  ;;  %v6098_v16 = vld [vmem:[#allocation5 + $0x138] sm:$0xff] }
  0x8a   :  { %v6030_v7 = vpack.c.bf16 %v7237_v56, %v7236_v26  ;;  %7241 = vst [vmem:[#allocation72_spill] sm:$0xff] %v6036_v36  ;;  %4598 = vmatpush3.bf16.msra.mxu1 %v5348_v22  ;;  %965 = vmatprep.mubr.f32.mxu1 %v7225_v57  ;;  %v6044_v26 = vsub.f32 %v71_v24, %v976_v54  ;;  %v7245_v24 = vand.u32 4294901760, %v5821_v61  ;;  %7248 = vst [vmem:[#allocation75_spill] sm:$0xff] %v6065_v3  ;;  %v6096_v54 = vld [vmem:[#allocation5 + $0x130] sm:$0xff]  ;;  %v6217_v22 = vld [vmem:[#allocation5 + $0x1e0] sm:$0xff] }
  0x8b   :  { %7235 = vst [vmem:[#allocation37_spill] sm:$0xff] %v6024_v53  ;;  %4600 = vmatprep.subr.bf16.mxu1 %v5350_v23  ;;  %4578 = vmatpush3.bf16.msra.mxu0 %v5915_v9  ;;  %v107_v57 = vcombine.high %v6016_v25, %v6016_v25  ;;  %v6057_v56 = vpack.c.bf16 %v7243_v18, %v7242_v48  ;;  %7249 = vst [vmem:[#allocation76_spill] sm:$0xff] %v6067_v29  ;;  %v1033_v27 = vand.u32 4294901760, %v90_v14 }
  0x8c   :  { %7238 = vst [vmem:[#allocation71_spill] sm:$0xff] %v6030_v7  ;;  %4580 = vmatprep.subr.bf16.mxu0 %v5922_v1  ;;  %v6063_v58 = vpack.c.bf16 %v7246_v0, %v7245_v24  ;;  %v1036_v9 = vand.u32 4294901760, %v91_v45  ;;  %v75_v1 = vld [vmem:[#allocation5 + $0x128] sm:$0xff]  ;;  %v1200_v49 = vsub.f32 %v6003_v33, %v7250_v50  ;;  %v7251_v61 = vand.u32 4294901760, %v6005_v12 }
  0x8d   :  { %7244 = vst [vmem:[#allocation73_spill] sm:$0xff] %v6057_v56  ;;  %v6071_v21 = vand.u32 4294901760, %v107_v57  ;;  %v6088_v48 = vpack.c.bf16 %v1030_v34, %v1027_v43  ;;  %v6090_v18 = vpack.c.bf16 %v982_v4, %v979_v6  ;;  %v6093_v0 = vsub.f32 %v72_v30, %v979_v6 }
  0x8e   :  { %7247 = vst [vmem:[#allocation74_spill] sm:$0xff] %v6063_v58  ;;  %4602 = vmatpush3.bf16.msra.mxu1 %v5360_v28  ;;  %v1207_v13 = vsub.f32 %v6005_v12, %v7251_v61  ;;  %v985_v50 = vand.u32 4294901760, %v74_v31  ;;  %v988_v61 = vand.u32 4294901760, %v75_v1  ;;  %v6100_v11 = vsub.f32 %v73_v42, %v982_v4 }
  0x8f   :  { %4604 = vmatprep.subr.bf16.mxu1 %v5371_v32  ;;  %4582 = vmatpush3.bf16.msra.mxu0 %v5928_v40  ;;  %7252 = vst [vmem:[#allocation77_spill] sm:$0xff] %v6088_v48  ;;  %7253 = vst [vmem:[#allocation78_spill] sm:$0xff] %v6090_v18  ;;  %v6103_v40 = vsub.f32 %v107_v57, %v6071_v21  ;;  %v6105_v43 = vpack.c.bf16 %v1036_v9, %v1033_v27  ;;  %v1039_v34 = vand.u32 4294901760, %v6082_v17 }
  0x90   :  { %4584 = vmatprep.subr.bf16.mxu0 %v6014_v8  ;;  %v1042_v30 = vand.u32 4294901760, %v6084_v55  ;;  %v1201_v24 = vand.u32 4294901760, %v1200_v49  ;;  %v1208_v8 = vand.u32 4294901760, %v1207_v13  ;;  %v1088_v42 = vsub.f32 %v6042_v51, %v7256_v10 }
  0x91   :  { %7254 = vst [vmem:[#allocation79_spill] sm:$0xff] %v6103_v40  ;;  %7255 = vst [vmem:[#allocation80_spill] sm:$0xff] %v6105_v43  ;;  %v7257_v4 = vand.u32 4294901760, %v6044_v26  ;;  %v7258_v20 = vand.u32 4294901760, %v6048_v44  ;;  %v991_v63 = vand.u32 4294901760, %v6096_v54  ;;  %v994_v49 = vand.u32 4294901760, %v6098_v16 }
  0x92   :  { %4606 = vmatpush3.bf16.msra.mxu1 %v5386_v38  ;;  %v6134_v38 = vpack.c.bf16 %v988_v61, %v985_v50  ;;  %v6139_v28 = vsub.f32 %v74_v31, %v985_v50  ;;  %v6141_v13 = vsub.f32 %v75_v1, %v988_v61  ;;  %v6144_v10 = vpack.c.bf16 %v1208_v8, %v1201_v24  ;;  %v6156_v8 = vld [vmem:[#allocation5 + $0x140] sm:$0xff] }
  0x93   :  { %v1095_v57 = vsub.f32 %v6044_v26, %v7257_v4  ;;  %4608 = vmatprep.subr.bf16.mxu1 %v5406_v47  ;;  %4586 = vmatpush3.bf16.msra.mxu0 %v6024_v53  ;;  %v1214_v6 = vsub.f32 %v6048_v44, %v7258_v20  ;;  %v6129_v4 = vsub.f32 %v90_v14, %v1033_v27  ;;  %v7259_v20 = vand.u32 4294901760, %v6069_v5 }
  0x94   :  { %4588 = vmatprep.subr.bf16.mxu0 %v6030_v7  ;;  %v6131_v47 = vsub.f32 %v91_v45, %v1036_v9  ;;  %7260 = vst [vmem:[#allocation81_spill] sm:$0xff] %v6139_v28  ;;  %7261 = vst [vmem:[#allocation82_spill] sm:$0xff] %v6141_v13  ;;  %v1089_v14 = vand.u32 4294901760, %v1088_v42  ;;  %v6146_v9 = vpack.c.bf16 %v1042_v30, %v1039_v34  ;;  %v95_v45 = vld [vmem:[#allocation5 + $0x1c8] sm:$0xff]  ;;  %v7263_v31 = vand.u32 4294901760, %v6093_v0 }
  0x95   :  { %v1221_v32 = vsub.f32 %v6069_v5, %v7259_v20  ;;  %7262 = vst [vmem:[#allocation83_spill] sm:$0xff] %v6144_v10  ;;  %v1096_v27 = vand.u32 4294901760, %v1095_v57  ;;  %v1215_v53 = vand.u32 4294901760, %v1214_v6  ;;  %v6150_v7 = vpack.c.bf16 %v994_v49, %v991_v63  ;;  %v6164_v57 = vld [vmem:[#allocation5 + $0x148] sm:$0xff] }
  0x96   :  { %4610 = vmatpush3.bf16.msra.mxu1 %v5442_v2  ;;  %v1102_v1 = vsub.f32 %v6093_v0, %v7263_v31  ;;  %v1045_v50 = vand.u32 4294901760, %v6127_v41  ;;  %v7264_v24 = vand.u32 4294901760, %v6100_v11  ;;  %v7265_v20 = vand.u32 4294901760, %v6103_v40  ;;  %v97_v2 = vld [vmem:[#allocation5 + $0x1d8] sm:$0xff] }
  0x97   :  { %4612 = vmatprep.subr.bf16.mxu1 %v5486_v52  ;;  %4590 = vmatpush3.bf16.msra.mxu0 %v6036_v36  ;;  %v1222_v36 = vand.u32 4294901760, %v1221_v32  ;;  %v1048_v52 = vand.u32 4294901760, %v95_v45  ;;  %v6172_v23 = vpack.c.bf16 %v1096_v27, %v1089_v14  ;;  %v6176_v6 = vsub.f32 %v6082_v17, %v1039_v34 }
  0x98   :  { %4592 = vmatprep.subr.bf16.mxu0 %v6057_v56  ;;  %v1109_v61 = vsub.f32 %v6100_v11, %v7264_v24  ;;  %v1071_v31 = vsub.f32 %v6103_v40, %v7265_v20  ;;  %v997_v24 = vand.u32 4294901760, %v6156_v8  ;;  %v6179_v42 = vsub.f32 %v6084_v55, %v1042_v30  ;;  %v96_v56 = vld [vmem:[#allocation5 + $0x1d0] sm:$0xff] }
  0x99   :  { %7266 = vst [vmem:[#allocation84_spill] sm:$0xff] %v6172_v23  ;;  %v1103_v32 = vand.u32 4294901760, %v1102_v1  ;;  %v1000_v20 = vand.u32 4294901760, %v6164_v57  ;;  %v6185_v14 = vsub.f32 %v6096_v54, %v991_v63  ;;  %v6188_v27 = vsub.f32 %v6098_v16, %v994_v49 }
  0x9a   :  { %4614 = vmatpush3.bf16.msra.mxu1 %v5495_v59  ;;  %v1110_v17 = vand.u32 4294901760, %v1109_v61  ;;  %v7269_v55 = vand.u32 4294901760, %v6129_v4  ;;  %v7270_v30 = vand.u32 4294901760, %v6131_v47  ;;  %v6199_v59 = vpack.c.bf16 %v1048_v52, %v1045_v50 }
  0x9b   :  { %4616 = vmatprep.subr.bf16.mxu1 %v5534_v19  ;;  %4594 = vmatpush3.bf16.msra.mxu0 %v6063_v58  ;;  %7267 = vst [vmem:[#allocation85_spill] sm:$0xff] %v6185_v14  ;;  %7268 = vst [vmem:[#allocation86_spill] sm:$0xff] %v6188_v27  ;;  %v1072_v58 = vand.u32 4294901760, %v1071_v31  ;;  %v6197_v19 = vpack.c.bf16 %v1222_v36, %v1215_v53  ;;  %v7272_v63 = vand.u32 4294901760, %v6139_v28  ;;  %v7273_v54 = vand.u32 4294901760, %v6141_v13  ;;  %v80_v53 = vld [vmem:[#allocation5 + $0x150] sm:$0xff] }
  0x9c   :  { %4628 = vmatprep.subr.bf16.mxu0 %v6065_v3  ;;  %v1228_v34 = vsub.f32 %v6129_v4, %v7269_v55  ;;  %v1235_v1 = vsub.f32 %v6131_v47, %v7270_v30  ;;  %v1051_v61 = vand.u32 4294901760, %v96_v56  ;;  %v1054_v55 = vand.u32 4294901760, %v97_v2  ;;  %v81_v30 = vld [vmem:[#allocation5 + $0x158] sm:$0xff] }
  0x9d   :  { %7271 = vst [vmem:[#allocation87_spill] sm:$0xff] %v6197_v19  ;;  %v1116_v16 = vsub.f32 %v6139_v28, %v7272_v63  ;;  %v1123_v49 = vsub.f32 %v6141_v13, %v7273_v54  ;;  %v6213_v63 = vpack.c.bf16 %v1000_v20, %v997_v24  ;;  %v6220_v15 = vsub.f32 %v6127_v41, %v1045_v50 }
  0x9e   :  { %4618 = vmatpush3.bf16.msra.mxu1 %v7222_v39  ;;  %863 = vmatmul.mubr.f32.vlgmr.msra.gmra.mrb[4].mxu0 %v5719_v46  ;;  %v6223_v36 = vpack.c.bf16 %v1110_v17, %v1103_v32  ;;  %v1229_v31 = vand.u32 4294901760, %v1228_v34  ;;  %v1236_v3 = vand.u32 4294901760, %v1235_v1  ;;  %v1003_v28 = vand.u32 4294901760, %v80_v53 }
  0x9f   :  { %4620 = vmatprep.subr.bf16.mxu1 %v7224_v35  ;;  %4630 = vmatpush3.bf16.msra.mxu0 %v6067_v29  ;;  %v6225_v35 = vld [vmem:[#allocation5 + $0x1e8] sm:$0xff]  ;;  %v6227_v29 = vsub.f32 %v95_v45, %v1048_v52  ;;  %v1117_v13 = vand.u32 4294901760, %v1116_v16  ;;  %v1124_v54 = vand.u32 4294901760, %v1123_v49  ;;  %v1006_v39 = vand.u32 4294901760, %v81_v30 }
  0xa0   :  { %4632 = vmatprep.subr.bf16.mxu0 %v6088_v48  ;;  %7274 = vst [vmem:[#allocation88_spill] sm:$0xff] %v6223_v36  ;;  %1073 = vmatprep.mubr.f32.mxu0 %v1072_v58  ;;  %v6230_v40 = vpack.c.bf16 %v1054_v55, %v1051_v61  ;;  %v7275_v41 = vand.u32 4294901760, %v6176_v6  ;;  %v7276_v32 = vand.u32 4294901760, %v6179_v42  ;;  %v1057_v52 = vand.u32 4294901760, %v6217_v22 }
  0xa1   :  { %v7277_v58 = vand.u32 4294901760, %v6185_v14  ;;  %v7278_v34 = vand.u32 4294901760, %v6188_v27  ;;  %v1060_v16 = vand.u32 4294901760, %v6225_v35  ;;  %v6259_v48 = vpack.c.bf16 %v1236_v3, %v1229_v31 }
  0xa2   :  { %4622 = vmatpush3.bf16.msra.mxu1 %v7226_v62  ;;  %v1242_v50 = vsub.f32 %v6176_v6, %v7275_v41  ;;  %v1249_v17 = vsub.f32 %v6179_v42, %v7276_v32  ;;  %v82_v41 = vld [vmem:[#allocation5 + $0x160] sm:$0xff]  ;;  %v83_v32 = vld [vmem:[#allocation5 + $0x168] sm:$0xff]  ;;  %v6252_v62 = vsub.f32 %v6156_v8, %v997_v24  ;;  %v6265_v49 = vsub.f32 %v97_v2, %v1054_v55  ;;  %v6275_v2 = vld [vmem:[#allocation5 + $0x1f0] sm:$0xff] }
  0xa3   :  { %4624 = vmatprep.subr.bf16.mxu1 %v7227_v60  ;;  %4634 = vmatpush3.bf16.msra.mxu0 %v6090_v18  ;;  %v1130_v45 = vsub.f32 %v6185_v14, %v7277_v58  ;;  %v1137_v1 = vsub.f32 %v6188_v27, %v7278_v34  ;;  %v6255_v18 = vsub.f32 %v6164_v57, %v1000_v20  ;;  %v1009_v14 = vand.u32 4294901760, %v82_v41  ;;  %v6277_v20 = vld [vmem:[#allocation5 + $0x1f8] sm:$0xff] }
  0xa4   :  { %4636 = vmatprep.subr.bf16.mxu0 %v6105_v43  ;;  %v6257_v58 = vsub.f32 %v96_v56, %v1051_v61  ;;  %7279 = vst [vmem:[#allocation89_spill] sm:$0xff] %v6259_v48  ;;  %v6261_v34 = vpack.c.bf16 %v1124_v54, %v1117_v13  ;;  %v6263_v27 = vpack.c.bf16 %v1006_v39, %v1003_v28  ;;  %v1243_v43 = vand.u32 4294901760, %v1242_v50 }
  0xa5   :  { %v1250_v60 = vand.u32 4294901760, %v1249_v17  ;;  %v1012_v8 = vand.u32 4294901760, %v83_v32  ;;  %v1131_v56 = vand.u32 4294901760, %v1130_v45  ;;  %v1138_v57 = vand.u32 4294901760, %v1137_v1 }
  0xa6   :  { %7280 = vst [vmem:[#allocation90_spill] sm:$0xff] %v6261_v34  ;;  %4626 = vmatpush3.bf16.msra.mxu1 %v7228_v37  ;;  %v6270_v3 = vpack.c.bf16 %v1060_v16, %v1057_v52  ;;  %v7281_v13 = vand.u32 4294901760, %v6220_v15  ;;  %v7282_v61 = vand.u32 4294901760, %v6227_v29  ;;  %v6288_v45 = vsub.f32 %v80_v53, %v1003_v28  ;;  %v85_v53 = vld [vmem:[#allocation5 + $0x178] sm:$0xff] }
  0xa7   :  { %4660 = vmatprep.subr.bf16.mxu1 %v6144_v10  ;;  %4638 = vmatpush3.bf16.msra.mxu0 %v6134_v38  ;;  %v6290_v1 = vsub.f32 %v81_v30, %v1006_v39  ;;  %v6298_v31 = vpack.c.bf16 %v1012_v8, %v1009_v14  ;;  %v1063_v54 = vand.u32 4294901760, %v6275_v2  ;;  %v1066_v50 = vand.u32 4294901760, %v6277_v20  ;;  %v84_v39 = vld [vmem:[#allocation5 + $0x170] sm:$0xff] }
  0xa8   :  { %v1256_v24 = vsub.f32 %v6220_v15, %v7281_v13  ;;  %4640 = vmatprep.subr.bf16.mxu0 %v6146_v9  ;;  %v1263_v55 = vsub.f32 %v6227_v29, %v7282_v61  ;;  %v6293_v13 = vand.u32 4294901760, %v6016_v25  ;;  %v6296_v61 = vpack.c.bf16 %v1250_v60, %v1243_v43 }
  0xa9   :  { %967 = vmatmul.mubr.f32.vlgmr.msra.gmra.mrb[4].mxu1 %v5719_v46  ;;  %v6305_v28 = vpack.c.bf16 %v1138_v57, %v1131_v56  ;;  %v6308_v60 = vsub.f32 %v6217_v22, %v1057_v52  ;;  %v6311_v43 = vsub.f32 %v6225_v35, %v1060_v16  ;;  %v7284_v17 = vand.u32 4294901760, %v6252_v62 }
  0xaa   :  { %4662 = vmatpush3.bf16.msra.mxu1 %v6172_v23  ;;  %7283 = vst [vmem:[#allocation91_spill] sm:$0xff] %v6296_v61  ;;  %1309 = vmatprep.mubr.f32.mxu1 %v6071_v21  ;;  %v1257_v46 = vand.u32 4294901760, %v1256_v24  ;;  %v1264_v30 = vand.u32 4294901760, %v1263_v55  ;;  %v7285_v23 = vand.u32 4294901760, %v6255_v18  ;;  %v7286_v57 = vand.u32 4294901760, %v6257_v58 }
  0xab   :  { %4664 = vmatprep.subr.bf16.mxu1 %v6197_v19  ;;  %4642 = vmatpush3.bf16.msra.mxu0 %v6150_v7  ;;  %v1144_v19 = vsub.f32 %v6252_v62, %v7284_v17  ;;  %v7287_v22 = vand.u32 4294901760, %v6265_v49  ;;  %v6330_v55 = vsub.f32 %v6016_v25, %v6293_v13  ;;  %v1015_v17 = vand.u32 4294901760, %v84_v39 }
  0xac   :  { %4644 = vmatprep.subr.bf16.mxu0 %v6199_v59  ;;  %v1151_v56 = vsub.f32 %v6255_v18, %v7285_v23  ;;  %v1270_v24 = vsub.f32 %v6257_v58, %v7286_v57  ;;  %v1018_v23 = vand.u32 4294901760, %v85_v53  ;;  %v6333_v10 = vsub.f32 %v82_v41, %v1009_v14 }
  0xad   :  { %v1277_v35 = vsub.f32 %v6265_v49, %v7287_v22  ;;  %v6335_v37 = vsub.f32 %v83_v32, %v1012_v8  ;;  %v6342_v16 = vsub.f32 %v6275_v2, %v1063_v54  ;;  %v6345_v25 = vsub.f32 %v6277_v20, %v1066_v50 }
  0xae   :  { %4666 = vmatpush3.bf16.msra.mxu1 %v6223_v36  ;;  %v6348_v14 = vpack.c.bf16 %v1264_v30, %v1257_v46  ;;  %v1145_v41 = vand.u32 4294901760, %v1144_v19  ;;  %v1152_v32 = vand.u32 4294901760, %v1151_v56  ;;  %v1271_v8 = vand.u32 4294901760, %v1270_v24 }
  0xaf   :  { %4668 = vmatprep.subr.bf16.mxu1 %v6259_v48  ;;  %4646 = vmatpush3.bf16.msra.mxu0 %v6213_v63  ;;  %v1278_v52 = vand.u32 4294901760, %v1277_v35  ;;  %v7289_v48 = vand.u32 4294901760, %v6288_v45  ;;  %v7290_v22 = vand.u32 4294901760, %v6290_v1  ;;  %v6360_v19 = vsub.f32 %v84_v39, %v1015_v17 }
  0xb0   :  { %4648 = vmatprep.subr.bf16.mxu0 %v6230_v40  ;;  %7288 = vst [vmem:[#allocation92_spill] sm:$0xff] %v6348_v14  ;;  %v6362_v30 = vsub.f32 %v85_v53, %v1018_v23  ;;  %v7292_v24 = vand.u32 4294901760, %v6311_v43  ;;  %v6375_v39 = vpack.c.bf16 %v1152_v32, %v1145_v41  ;;  %v6377_v53 = vpack.c.bf16 %v1066_v50, %v1063_v54 }
  0xb1   :  { %v1158_v57 = vsub.f32 %v6288_v45, %v7289_v48  ;;  %v1165_v2 = vsub.f32 %v6290_v1, %v7290_v22  ;;  %v7291_v48 = vand.u32 4294901760, %v6308_v60  ;;  %v6379_v20 = vpack.c.bf16 %v1018_v23, %v1015_v17 }
  0xb2   :  { %4670 = vmatpush3.bf16.msra.mxu1 %v6261_v34  ;;  %v1291_v35 = vsub.f32 %v6311_v43, %v7292_v24  ;;  %v6381_v36 = vpack.c.bf16 %v1278_v52, %v1271_v8  ;;  %v7293_v34 = vand.u32 4294901760, %v6330_v55  ;;  %v7294_v46 = vand.u32 4294901760, %v6333_v10 }
  0xb3   :  { %4672 = vmatprep.subr.bf16.mxu1 %v6296_v61  ;;  %4650 = vmatpush3.bf16.msra.mxu0 %v6263_v27  ;;  %v1284_v56 = vsub.f32 %v6308_v60, %v7291_v48  ;;  %v1159_v61 = vand.u32 4294901760, %v1158_v57  ;;  %v1166_v48 = vand.u32 4294901760, %v1165_v2  ;;  %v7295_v41 = vand.u32 4294901760, %v6335_v37 }
  0xb4   :  { %4652 = vmatprep.subr.bf16.mxu0 %v6270_v3  ;;  %v1077_v24 = vsub.f32 %v6330_v55, %v7293_v34  ;;  %v1172_v22 = vsub.f32 %v6333_v10, %v7294_v46  ;;  %v7098_v50 = vand.u32 4294901760, %v6360_v19  ;;  %v7097_v52 = vand.u32 4294901760, %v6362_v30 }
  0xb5   :  { %v1179_v54 = vsub.f32 %v6335_v37, %v7295_v41  ;;  %v1285_v17 = vand.u32 4294901760, %v1284_v56  ;;  %v1292_v34 = vand.u32 4294901760, %v1291_v35  ;;  %v7296_v23 = vand.u32 4294901760, %v6342_v16 }
  0xb6   :  { %4674 = vmatpush3.bf16.msra.mxu1 %v6305_v28  ;;  %v7297_v32 = vand.u32 4294901760, %v6345_v25  ;;  %v6406_v2 = vpack.c.bf16 %v6005_v12, %v6003_v33  ;;  %v6408_v46 = vpack.c.bf16 %v1166_v48, %v1159_v61  ;;  %v1078_v41 = vand.u32 4294901760, %v1077_v24 }
  0xb7   :  { %4676 = vmatprep.subr.bf16.mxu1 %v6348_v14  ;;  %4654 = vmatpush3.bf16.msra.mxu0 %v6298_v31  ;;  %v1298_v57 = vsub.f32 %v6342_v16, %v7296_v23  ;;  %v1173_v56 = vand.u32 4294901760, %v1172_v22  ;;  %v1180_v35 = vand.u32 4294901760, %v1179_v54  ;;  %v1186_v23 = vsub.f32 %v6360_v19, %v7098_v50 }
  0xb8   :  { %v1305_v8 = vsub.f32 %v6345_v25, %v7297_v32  ;;  %4656 = vmatprep.subr.bf16.mxu0 %v6377_v53  ;;  %v1193_v32 = vsub.f32 %v6362_v30, %v7097_v52  ;;  %v6419_v14 = vpack.c.bf16 %v1292_v34, %v1285_v17  ;;  %v6423_v61 = vpack.c.bf16 %v6044_v26, %v6042_v51 }
  0xb9   :  { %v1299_v22 = vand.u32 4294901760, %v1298_v57  ;;  %v6428_v24 = vpack.c.bf16 %v6069_v5, %v6048_v44  ;;  %v6431_v54 = vpack.c.bf16 %v1180_v35, %v1173_v56  ;;  %v1187_v52 = vand.u32 4294901760, %v1186_v23  ;;  %v7307_v35 = vld [vmem:[#allocation81_spill] sm:$0xff]  ;;  %v7308_v23 = vld [vmem:[#allocation82_spill] sm:$0xff] }
  0xba   :  { %4678 = vmatpush3.bf16.msra.mxu1 %v6375_v39  ;;  %7298 = vst [vmem:[#allocation93_spill] sm:$0xff] %v6419_v14  ;;  %7299 = vst [vmem:[#allocation94_spill] sm:$0xff] %v6423_v61  ;;  %v1306_v48 = vand.u32 4294901760, %v1305_v8  ;;  %v1194_v17 = vand.u32 4294901760, %v1193_v32  ;;  %v6439_v57 = vpack.c.bf16 %v6100_v11, %v6093_v0  ;;  %v6444_v8 = vpack.c.bf16 %v6131_v47, %v6129_v4 }
  0xbb   :  { %4680 = vmatprep.subr.bf16.mxu1 %v6381_v36  ;;  %4658 = vmatpush3.bf16.msra.mxu0 %v6379_v20  ;;  %7300 = vst [vmem:[#allocation95_spill] sm:$0xff] %v6428_v24  ;;  %7301 = vst [vmem:[#allocation96_spill] sm:$0xff] %v6431_v54  ;;  %v6454_v32 = vpack.c.bf16 %v7308_v23, %v7307_v35 }
  0xbc   :  { %4692 = vmatprep.subr.bf16.mxu0 %v6406_v2  ;;  %v6435_v34 = vpack.c.bf16 %v1306_v48, %v1299_v22  ;;  %7303 = vst [vmem:[#allocation98_spill] sm:$0xff] %v6439_v57  ;;  %7304 = vst [vmem:[#allocation99_spill] sm:$0xff] %v6444_v8  ;;  %v6448_v56 = vpack.c.bf16 %v1194_v17, %v1187_v52  ;;  %v6459_v22 = vpack.c.bf16 %v6179_v42, %v6176_v6  ;;  %v7311_v48 = vld [vmem:[#allocation75_spill] sm:$0xff]  ;;  %v7312_v52 = vld [vmem:[#allocation85_spill] sm:$0xff] }
  0xbd   :  { %7309 = vst [vmem:[#allocation81_spill] sm:$0xff] %v6454_v32  ;;  %v7313_v17 = vld [vmem:[#allocation86_spill] sm:$0xff] }
  0xbe   :  { %4682 = vmatpush3.bf16.msra.mxu1 %v6408_v46  ;;  %1079 = vmatmul.mubr.f32.vlgmr.msra.gmra.mrb[6].mxu0 %v1078_v41  ;;  %7302 = vst [vmem:[#allocation97_spill] sm:$0xff] %v6435_v34  ;;  %v7305_v41 = vld [vmem:[#allocation79_spill] sm:$0xff]  ;;  %7310 = vst [vmem:[#allocation82_spill] sm:$0xff] %v6459_v22  ;;  %v6466_v50 = vpack.c.bf16 %v7313_v17, %v7312_v52 }
  0xbf   :  { %4684 = vmatprep.subr.bf16.mxu1 %v6419_v14  ;;  %4694 = vmatpush3.bf16.msra.mxu0 %v6423_v61  ;;  %7306 = vst [vmem:[#allocation79_spill] sm:$0xff] %v6448_v56  ;;  %v7329_v61 = vand.u32 4294901760, %v6044_v26  ;;  %v7333_v26 = vand.u32 4294901760, %v6100_v11  ;;  %v7336_v11 = vand.u32 4294901760, %v7307_v35  ;;  %v7340_v35 = vand.u32 4294901760, %v7312_v52 }
  0xc0   :  { %4696 = vmatprep.subr.bf16.mxu0 %v6428_v24  ;;  %1446 = vmatprep.mubr.f32.mxu0 %v7305_v41  ;;  %7314 = vst [vmem:[#allocation75_spill] sm:$0xff] %v6466_v50  ;;  %v7322_v24 = vld [vmem:[#allocation80_spill] sm:$0xff]  ;;  %v7345_v52 = vand.u32 4294901760, %v6252_v62 }
  0xc2   :  { %4686 = vmatpush3.bf16.msra.mxu1 %v6431_v54  ;;  %v7321_v54 = vld [vmem:[#allocation78_spill] sm:$0xff] }
  0xc3   :  { %4688 = vmatprep.subr.bf16.mxu1 %v6435_v34  ;;  %4698 = vmatpush3.bf16.msra.mxu0 %v6439_v57  ;;  %v6471_v57 = vpack.c.bf16 %v6227_v29, %v6220_v15  ;;  %v7318_v34 = vld [vmem:[#allocation77_spill] sm:$0xff] }
  0xc4   :  { %4700 = vmatprep.subr.bf16.mxu0 %v6444_v8  ;;  %v7316_v8 = vld [vmem:[#allocation76_spill] sm:$0xff] }
  0xc5   :  { %7315 = vst [vmem:[#allocation85_spill] sm:$0xff] %v6471_v57 }
  0xc6   :  { %4690 = vmatpush3.bf16.msra.mxu1 %v6448_v56  ;;  %v7317_v56 = vand.u32 4294901760, %v7305_v41  ;;  %v6493_v41 = vpack.c.bf16 %v6290_v1, %v6288_v45 }
  0xc7   :  { %4724 = vmatprep.subr.bf16.mxu1 %v7311_v48  ;;  %4702 = vmatpush3.bf16.msra.mxu0 %v6454_v32  ;;  %v6481_v32 = vpack.c.bf16 %v6255_v18, %v6252_v62  ;;  %v7349_v62 = vand.u32 4294901760, %v6288_v45  ;;  %v7355_v45 = vand.u32 4294901760, %v6333_v10 }
  0xc8   :  { %4704 = vmatprep.subr.bf16.mxu0 %v6459_v22  ;;  %v6486_v22 = vpack.c.bf16 %v6265_v49, %v6257_v58  ;;  %7323 = vst [vmem:[#allocation77_spill] sm:$0xff] %v6493_v41 }
  0xc9   :  { %1311 = vmatmul.mubr.f32.vlgmr.msra.gmra.mrb[6].mxu1 %v6293_v13  ;;  %7319 = vst [vmem:[#allocation86_spill] sm:$0xff] %v6481_v32 }
  0xca   :  { %4726 = vmatpush3.bf16.msra.mxu1 %v7316_v8  ;;  %1553 = vmatprep.mubr.f32.mxu1 %v7317_v56  ;;  %7320 = vst [vmem:[#allocation76_spill] sm:$0xff] %v6486_v22  ;;  %v6498_v56 = vpack.c.bf16 %v6311_v43, %v6308_v60 }
  0xcb   :  { %4728 = vmatprep.subr.bf16.mxu1 %v7318_v34  ;;  %4706 = vmatpush3.bf16.msra.mxu0 %v6466_v50 }
  0xcc   :  { %4708 = vmatprep.subr.bf16.mxu0 %v6471_v57  ;;  %7324 = vst [vmem:[#allocation78_spill] sm:$0xff] %v6498_v56  ;;  %v6505_v57 = vpack.c.bf16 %v6335_v37, %v6333_v10  ;;  %v7362_v10 = vand.u32 4294901760, %v6362_v30 }
  0xce   :  { %4730 = vmatpush3.bf16.msra.mxu1 %v7321_v54  ;;  %7325 = vst [vmem:[#allocation80_spill] sm:$0xff] %v6505_v57 }
  0xcf   :  { %4732 = vmatprep.subr.bf16.mxu1 %v7322_v24  ;;  %4710 = vmatpush3.bf16.msra.mxu0 %v6481_v32  ;;  %v6510_v32 = vpack.c.bf16 %v6345_v25, %v6342_v16 }
  0xd0   :  { %4712 = vmatprep.subr.bf16.mxu0 %v6486_v22  ;;  %v6517_v22 = vpack.c.bf16 %v6362_v30, %v6360_v19  ;;  %v7366_v30 = vld [vmem:[#allocation13_spill] sm:$0xff] }
  0xd2   :  { %4734 = vmatpush3.bf16.msra.mxu1 %v6134_v38 }
  0xd3   :  { %4736 = vmatprep.subr.bf16.mxu1 %v6146_v9  ;;  %4714 = vmatpush3.bf16.msra.mxu0 %v6493_v41  ;;  %v7326_v41 = vand.u32 4294901760, %v6003_v33  ;;  %v7330_v33 = vand.u32 4294901760, %v6048_v44  ;;  %v7335_v44 = vand.u32 4294901760, %v6131_v47  ;;  %v7338_v47 = vand.u32 4294901760, %v6176_v6 }
  0xd4   :  { %4716 = vmatprep.subr.bf16.mxu0 %v6498_v56  ;;  %v7327_v56 = vand.u32 4294901760, %v6005_v12  ;;  %v7331_v12 = vand.u32 4294901760, %v6069_v5  ;;  %v7334_v5 = vand.u32 4294901760, %v6129_v4  ;;  %v7339_v4 = vand.u32 4294901760, %v6179_v42 }
  0xd5   :  { %v7342_v42 = vand.u32 4294901760, %v6220_v15  ;;  %v7343_v6 = vand.u32 4294901760, %v6227_v29  ;;  %v7346_v15 = vand.u32 4294901760, %v6255_v18  ;;  %v7347_v29 = vand.u32 4294901760, %v6257_v58 }
  0xd6   :  { %4738 = vmatpush3.bf16.msra.mxu1 %v6150_v7  ;;  %v6524_v50 = vpack.c.bf16 %v7327_v56, %v7326_v41  ;;  %v6540_v41 = vpack.c.bf16 %v7331_v12, %v7330_v33  ;;  %v6560_v56 = vld [vmem:[#allocation2] sm:$0xcc]  ;;  %v6576_v12 = vpack.c.bf16 %v7339_v4, %v7338_v47  ;;  %v7353_v58 = vand.u32 4294901760, %v6311_v43 }
  0xd7   :  { %4740 = vmatprep.subr.bf16.mxu1 %v6199_v59  ;;  %4718 = vmatpush3.bf16.msra.mxu0 %v6505_v57  ;;  %v7328_v57 = vand.u32 4294901760, %v6042_v51  ;;  %v7332_v51 = vand.u32 4294901760, %v6093_v0  ;;  %v7337_v0 = vand.u32 4294901760, %v7308_v23  ;;  %v7341_v23 = vand.u32 4294901760, %v7313_v17 }
  0xd8   :  { %4720 = vmatprep.subr.bf16.mxu0 %v6510_v32  ;;  %v6606_v17 = vpack.c.bf16 %v7346_v15, %v7345_v52  ;;  %v7359_v43 = vand.u32 4294901760, %v6345_v25  ;;  %v7364_v25 = vld [vmem:[#allocation11_spill] sm:$0xff]  ;;  %v1842_v15 = vrot.slane %v6560_v56, 2 }
  0xd9   :  { %v6533_v14 = vpack.c.bf16 %v7329_v61, %v7328_v57  ;;  %v6550_v61 = vpack.c.bf16 %v7333_v26, %v7332_v51  ;;  %v6557_v57 = vpack.c.bf16 %v7335_v44, %v7334_v5  ;;  %v6569_v33 = vpack.c.bf16 %v7337_v0, %v7336_v11  ;;  %v7368_v52 = vld [vmem:[#allocation15_spill] sm:$0xff] }
  0xda   :  { %4742 = vmatpush3.bf16.msra.mxu1 %v6213_v63  ;;  %v1840_v51 = vcombine.high %v6560_v56, %v6560_v56  ;;  %v6587_v26 = vpack.c.bf16 %v7341_v23, %v7340_v35  ;;  %v6594_v5 = vpack.c.bf16 %v7343_v6, %v7342_v42  ;;  %v7344_v11 = vand.u32 4294901760, %v6330_v55  ;;  %v7376_v56 = vld [vmem:[#allocation24_spill] sm:$0xff] }
  0xdb   :  { %4744 = vmatprep.subr.bf16.mxu1 %v6230_v40  ;;  %4722 = vmatpush3.bf16.msra.mxu0 %v6517_v22 }
  0xdc   :  { %4756 = vmatprep.subr.bf16.mxu0 %v6524_v50  ;;  %v1843_v44 = vrot.slane %v1840_v51, 2 }
  0xde   :  { %4746 = vmatpush3.bf16.msra.mxu1 %v6263_v27  ;;  %1449 = vmatmul.mubr.f32.vlgmr.msra.gmra.mrb[8].mxu0 %v6330_v55  ;;  %v7348_v55 = vand.u32 4294901760, %v6265_v49  ;;  %v6615_v47 = vand.u32 4294901760, %v1843_v44  ;;  %v7352_v49 = vand.u32 4294901760, %v6308_v60  ;;  %v7358_v60 = vand.u32 4294901760, %v6342_v16 }
  0xdf   :  { %4748 = vmatprep.subr.bf16.mxu1 %v6270_v3  ;;  %4758 = vmatpush3.bf16.msra.mxu0 %v6533_v14 }
  0xe0   :  { %4760 = vmatprep.subr.bf16.mxu0 %v6540_v41  ;;  %1723 = vmatprep.mubr.f32.mxu0 %v6071_v21  ;;  %v6613_v0 = vpack.c.bf16 %v7348_v55, %v7347_v29  ;;  %v6631_v4 = vpack.c.bf16 %v7353_v58, %v7352_v49  ;;  %v6634_v51 = vsub.f32 %v1843_v44, %v6615_v47  ;;  %v7369_v29 = vld [vmem:[#allocation18_spill] sm:$0xff]  ;;  %v7370_v55 = vld [vmem:[#allocation16_spill] sm:$0xff]  ;;  %v6686_v49 = vand.u32 4294901760, %v1842_v15  ;;  %v7373_v58 = vld [vmem:[#allocation21_spill] sm:$0xff] }
  0xe1   :  { %v6650_v23 = vpack.c.bf16 %v7359_v43, %v7358_v60  ;;  %v7377_v43 = vld [vmem:[#allocation26_spill] sm:$0xff] }
  0xe2   :  { %4750 = vmatpush3.bf16.msra.mxu1 %v6298_v31  ;;  %7354 = vst [vmem:[#allocation101_spill] sm:$0xff] %v6631_v4  ;;  %v7116_v42 = vand.u32 4294901760, %v6634_v51  ;;  %v6694_v60 = vsub.f32 %v1842_v15, %v6686_v49 }
  0xe3   :  { %4752 = vmatprep.subr.bf16.mxu1 %v6377_v53  ;;  %4762 = vmatpush3.bf16.msra.mxu0 %v6550_v61  ;;  %7360 = vst [vmem:[#allocation103_spill] sm:$0xff] %v6650_v23 }
  0xe4   :  { %4764 = vmatprep.subr.bf16.mxu0 %v6557_v57  ;;  %v1949_v16 = vsub.f32 %v6634_v51, %v7116_v42  ;;  %v7387_v42 = vld [vmem:[#allocation33_spill] sm:$0xff] }
  0xe6   :  { %4754 = vmatpush3.bf16.msra.mxu1 %v6379_v20  ;;  %v1950_v44 = vand.u32 4294901760, %v1949_v16  ;;  %v7121_v16 = vand.u32 4294901760, %v6694_v60 }
  0xe7   :  { %4788 = vmatprep.subr.bf16.mxu1 %v7311_v48  ;;  %4766 = vmatpush3.bf16.msra.mxu0 %v6569_v33 }
  0xe8   :  { %4768 = vmatprep.subr.bf16.mxu0 %v6576_v12  ;;  %v1955_v15 = vsub.f32 %v6694_v60, %v7121_v16  ;;  %v7394_v16 = vld [vmem:[#allocation41_spill] sm:$0xff] }
  0xe9   :  { %1557 = vmatmul.mubr.f32.vlgmr.msra.gmra.mrb[8].mxu1 %v7344_v11  ;;  %v7367_v11 = vld [vmem:[#allocation14_spill] sm:$0xff] }
  0xea   :  { %4790 = vmatpush3.bf16.msra.mxu1 %v7316_v8  ;;  %1827 = vmatprep.mubr.f32.mxu1 %v6071_v21  ;;  %v7350_v21 = vand.u32 4294901760, %v6290_v1  ;;  %v7356_v1 = vand.u32 4294901760, %v6335_v37  ;;  %v7361_v37 = vand.u32 4294901760, %v6360_v19  ;;  %v7365_v19 = vld [vmem:[#allocation12_spill] sm:$0xff] }
  0xeb   :  { %4792 = vmatprep.subr.bf16.mxu1 %v7318_v34  ;;  %4770 = vmatpush3.bf16.msra.mxu0 %v6587_v26 }
  0xec   :  { %4772 = vmatprep.subr.bf16.mxu0 %v6594_v5  ;;  %v6624_v18 = vpack.c.bf16 %v7350_v21, %v7349_v62  ;;  %v6643_v35 = vpack.c.bf16 %v7356_v1, %v7355_v45  ;;  %v6660_v6 = vpack.c.bf16 %v7362_v10, %v7361_v37  ;;  %v7371_v62 = vld [vmem:[#allocation17_spill] sm:$0xff]  ;;  %v7372_v21 = vld [vmem:[#allocation20_spill] sm:$0xff]  ;;  %v7374_v45 = vld [vmem:[#allocation19_spill] sm:$0xff] }
  0xed   :  { %v7375_v1 = vld [vmem:[#allocation22_spill] sm:$0xff]  ;;  %v7379_v37 = vld [vmem:[#allocation25_spill] sm:$0xff]  ;;  %v7380_v10 = vld [vmem:[#allocation28_spill] sm:$0xff] }
  0xee   :  { %4794 = vmatpush3.bf16.msra.mxu1 %v7321_v54  ;;  %7351 = vst [vmem:[#allocation100_spill] sm:$0xff] %v6624_v18  ;;  %7357 = vst [vmem:[#allocation102_spill] sm:$0xff] %v6643_v35 }
  0xef   :  { %4796 = vmatprep.subr.bf16.mxu1 %v7322_v24  ;;  %4774 = vmatpush3.bf16.msra.mxu0 %v6606_v17  ;;  %7363 = vst [vmem:[#allocation104_spill] sm:$0xff] %v6660_v6 }
  0xf0   :  { %4776 = vmatprep.subr.bf16.mxu0 %v6613_v0 }
  0xf2   :  { %4798 = vmatpush3.bf16.msra.mxu1 %v6134_v38 }
  0xf3   :  { %4800 = vmatprep.subr.bf16.mxu1 %v6146_v9  ;;  %4778 = vmatpush3.bf16.msra.mxu0 %v6624_v18  ;;  %v7396_v18 = vld [vmem:[#allocation45_spill] sm:$0xff] }
  0xf4   :  { %4780 = vmatprep.subr.bf16.mxu0 %v6631_v4  ;;  %v7393_v4 = vld [vmem:[#allocation44_spill] sm:$0xff] }
  0xf6   :  { %4802 = vmatpush3.bf16.msra.mxu1 %v6150_v7 }
  0xf7   :  { %4804 = vmatprep.subr.bf16.mxu1 %v6199_v59  ;;  %4782 = vmatpush3.bf16.msra.mxu0 %v6643_v35  ;;  %v7391_v35 = vld [vmem:[#allocation38_spill] sm:$0xff] }
  0xf8   :  { %4784 = vmatprep.subr.bf16.mxu0 %v6650_v23  ;;  %v7390_v23 = vld [vmem:[#allocation35_spill] sm:$0xff] }
  0xfa   :  { %4806 = vmatpush3.bf16.msra.mxu1 %v6213_v63 }
  0xfb   :  { %4808 = vmatprep.subr.bf16.mxu1 %v6230_v40  ;;  %4786 = vmatpush3.bf16.msra.mxu0 %v6660_v6  ;;  %v1956_v6 = vand.u32 4294901760, %v1955_v15  ;;  %v7397_v15 = vld [vmem:[#allocation48_spill] sm:$0xff] }
  0xfc   :  { %4820 = vmatprep.subr.bf16.mxu0 %v7364_v25 }
  0xfe   :  { %4810 = vmatpush3.bf16.msra.mxu1 %v6263_v27  ;;  %1725 = vmatmul.mubr.f32.vlgmr.msra.gmra.mrb[10].mxu0 %v6293_v13 }
  0xff   :  { %4812 = vmatprep.subr.bf16.mxu1 %v6270_v3  ;;  %4822 = vmatpush3.bf16.msra.mxu0 %v7365_v19 }
 0x100   :  { %4824 = vmatprep.subr.bf16.mxu0 %v7366_v30  ;;  %1951 = vmatprep.mubr.f32.mxu0 %v1950_v44  ;;  %v7381_v44 = vld [vmem:[#allocation30_spill] sm:$0xff] }
 0x102   :  { %4814 = vmatpush3.bf16.msra.mxu1 %v6298_v31 }
 0x103   :  { %4816 = vmatprep.subr.bf16.mxu1 %v6377_v53  ;;  %4826 = vmatpush3.bf16.msra.mxu0 %v7367_v11 }
 0x104   :  { %4828 = vmatprep.subr.bf16.mxu0 %v7368_v52 }
 0x106   :  { %4818 = vmatpush3.bf16.msra.mxu1 %v6379_v20 }
 0x107   :  { %4852 = vmatprep.subr.bf16.mxu1 %v7369_v29  ;;  %4830 = vmatpush3.bf16.msra.mxu0 %v7370_v55  ;;  %v7382_v29 = vld [vmem:[#allocation27_spill] sm:$0xff] }
 0x108   :  { %4832 = vmatprep.subr.bf16.mxu0 %v7371_v62 }
 0x109   :  { %1829 = vmatmul.mubr.f32.vlgmr.msra.gmra.mrb[10].mxu1 %v6293_v13  ;;  %v7378_v13 = vld [vmem:[#allocation23_spill] sm:$0xff] }
 0x10a   :  { %4854 = vmatpush3.bf16.msra.mxu1 %v7372_v21  ;;  %2187 = vmatprep.mubr.f32.mxu1 %v6615_v47  ;;  %v7383_v21 = vld [vmem:[#allocation29_spill] sm:$0xff] }
 0x10b   :  { %4856 = vmatprep.subr.bf16.mxu1 %v7373_v58  ;;  %4834 = vmatpush3.bf16.msra.mxu0 %v7374_v45  ;;  %v7384_v58 = vld [vmem:[#allocation32_spill] sm:$0xff] }
 0x10c   :  { %4836 = vmatprep.subr.bf16.mxu0 %v7375_v1 }
 0x10e   :  { %4858 = vmatpush3.bf16.msra.mxu1 %v7376_v56  ;;  %v7385_v56 = vld [vmem:[#allocation34_spill] sm:$0xff] }
 0x10f   :  { %4860 = vmatprep.subr.bf16.mxu1 %v7377_v43  ;;  %4838 = vmatpush3.bf16.msra.mxu0 %v7378_v13  ;;  %v7386_v43 = vld [vmem:[#allocation31_spill] sm:$0xff] }
 0x110   :  { %4840 = vmatprep.subr.bf16.mxu0 %v7379_v37 }
 0x112   :  { %4862 = vmatpush3.bf16.msra.mxu1 %v7380_v10  ;;  %v7388_v10 = vld [vmem:[#allocation36_spill] sm:$0xff] }
 0x113   :  { %4864 = vmatprep.subr.bf16.mxu1 %v7381_v44  ;;  %4842 = vmatpush3.bf16.msra.mxu0 %v7382_v29  ;;  %v7389_v44 = vld [vmem:[#allocation39_spill] sm:$0xff] }
 0x114   :  { %4844 = vmatprep.subr.bf16.mxu0 %v7383_v21 }
 0x116   :  { %4866 = vmatpush3.bf16.msra.mxu1 %v7384_v58  ;;  %v7392_v58 = vld [vmem:[#allocation42_spill] sm:$0xff] }
 0x117   :  { %4868 = vmatprep.subr.bf16.mxu1 %v7385_v56  ;;  %4846 = vmatpush3.bf16.msra.mxu0 %v7386_v43  ;;  %v7395_v56 = vld [vmem:[#allocation43_spill] sm:$0xff] }
 0x118   :  { %4848 = vmatprep.subr.bf16.mxu0 %v7387_v42 }
 0x11a   :  { %4870 = vmatpush3.bf16.msra.mxu1 %v7388_v10  ;;  %v7398_v10 = vld [vmem:[#allocation46_spill] sm:$0xff] }
 0x11b   :  { %4872 = vmatprep.subr.bf16.mxu1 %v7389_v44  ;;  %4850 = vmatpush3.bf16.msra.mxu0 %v7390_v23  ;;  %v7399_v44 = vld [vmem:[#allocation47_spill] sm:$0xff] }
 0x11c   :  { %4884 = vmatprep.subr.bf16.mxu0 %v7391_v35  ;;  %v7400_v35 = vld [vmem:[#allocation52_spill] sm:$0xff] }
 0x11e   :  { %4874 = vmatpush3.bf16.msra.mxu1 %v7392_v58  ;;  %1957 = vmatmul.mubr.f32.vlgmr.msra.gmra.mrb[12].mxu0 %v1956_v6  ;;  %v7401_v6 = vld [vmem:[#allocation49_spill] sm:$0xff]  ;;  %v7405_v58 = vld [vmem:[#allocation63_spill] sm:$0xff] }
 0x11f   :  { %4876 = vmatprep.subr.bf16.mxu1 %v7393_v4  ;;  %4886 = vmatpush3.bf16.msra.mxu0 %v7394_v16  ;;  %v7402_v4 = vld [vmem:[#allocation50_spill] sm:$0xff] }
 0x120   :  { %4888 = vmatprep.subr.bf16.mxu0 %v7395_v56  ;;  %2324 = vmatprep.mubr.f32.mxu0 %v6634_v51  ;;  %v7404_v16 = vld [vmem:[#allocation62_spill] sm:$0xff]  ;;  %v7406_v56 = vld [vmem:[#allocation64_spill] sm:$0xff] }
 0x122   :  { %4878 = vmatpush3.bf16.msra.mxu1 %v7396_v18  ;;  %v7403_v18 = vand.u32 4294901760, %v6634_v51  ;;  %v7408_v51 = vld [vmem:[#allocation66_spill] sm:$0xff] }
 0x123   :  { %4880 = vmatprep.subr.bf16.mxu1 %v7397_v15  ;;  %4890 = vmatpush3.bf16.msra.mxu0 %v7398_v10  ;;  %v7407_v15 = vld [vmem:[#allocation65_spill] sm:$0xff] }
 0x124   :  { %4892 = vmatprep.subr.bf16.mxu0 %v7399_v44 }
 0x126   :  { %4882 = vmatpush3.bf16.msra.mxu1 %v7400_v35 }
 0x127   :  { %4916 = vmatprep.subr.bf16.mxu1 %v7364_v25  ;;  %4894 = vmatpush3.bf16.msra.mxu0 %v7401_v6  ;;  %v7409_v6 = vld [vmem:[#allocation67_spill] sm:$0xff] }
 0x128   :  { %4896 = vmatprep.subr.bf16.mxu0 %v7402_v4  ;;  %v7410_v4 = vld [vmem:[#allocation68_spill] sm:$0xff] }
 0x129   :  { %2189 = vmatmul.mubr.f32.vlgmr.msra.gmra.mrb[12].mxu1 %v6686_v49 }
 0x12a   :  { %4918 = vmatpush3.bf16.msra.mxu1 %v7365_v19  ;;  %2431 = vmatprep.mubr.f32.mxu1 %v7403_v18  ;;  %v7411_v18 = vld [vmem:[#allocation69_spill] sm:$0xff] }
 0x12b   :  { %4920 = vmatprep.subr.bf16.mxu1 %v7366_v30  ;;  %4898 = vmatpush3.bf16.msra.mxu0 %v7404_v16  ;;  %v7412_v16 = vld [vmem:[#allocation70_spill] sm:$0xff] }
 0x12c   :  { %4900 = vmatprep.subr.bf16.mxu0 %v7405_v58 }
 0x12e   :  { %4922 = vmatpush3.bf16.msra.mxu1 %v7367_v11 }
 0x12f   :  { %4924 = vmatprep.subr.bf16.mxu1 %v7368_v52  ;;  %4902 = vmatpush3.bf16.msra.mxu0 %v7406_v56  ;;  %v3627_v10 = vpop.f32.mrb[0].mxu0  ;;  %v7413_v56 = vld [vmem:[#allocation51_spill] sm:$0xff] }
 0x130   :  { %4904 = vmatprep.subr.bf16.mxu0 %v7407_v15  ;;  %v3628_v44 = vpop.f32.mrb[1].mxu0 }
 0x131   :  { %v3629_v35 = vadd.f32 %v3628_v44, %v3627_v10  ;;  %v7414_v44 = vld [vmem:[#allocation53_spill] sm:$0xff] }
 0x132   :  { %4926 = vmatpush3.bf16.msra.mxu1 %v7370_v55 }
 0x133   :  { %4928 = vmatprep.subr.bf16.mxu1 %v7371_v62  ;;  %4906 = vmatpush3.bf16.msra.mxu0 %v7408_v51 }
 0x134   :  { %4908 = vmatprep.subr.bf16.mxu0 %v7409_v6  ;;  %v7415_v6 = vld [vmem:[#allocation54_spill] sm:$0xff] }
 0x136   :  { %4930 = vmatpush3.bf16.msra.mxu1 %v7374_v45 }
 0x137   :  { %4932 = vmatprep.subr.bf16.mxu1 %v7375_v1  ;;  %4910 = vmatpush3.bf16.msra.mxu0 %v7410_v4  ;;  %v6757_v4 = vld [vmem:[#allocation2 + $0x8] sm:$0xcc] }
 0x138   :  { %4912 = vmatprep.subr.bf16.mxu0 %v7411_v18  ;;  %v7416_v18 = vld [vmem:[#allocation55_spill] sm:$0xff] }
 0x13a   :  { %4934 = vmatpush3.bf16.msra.mxu1 %v7378_v13 }
 0x13b   :  { %4936 = vmatprep.subr.bf16.mxu1 %v7379_v37  ;;  %4914 = vmatpush3.bf16.msra.mxu0 %v7412_v16  ;;  %v7417_v16 = vld [vmem:[#allocation56_spill] sm:$0xff] }
 0x13c   :  { %v3662_v58 = vpop.f32.mrb[0].mxu1  ;;  %4948 = vmatprep.subr.bf16.mxu0 %v7413_v56  ;;  %v7419_v56 = vld [vmem:[#allocation58_spill] sm:$0xff] }
 0x13d   :  { %v3663_v15 = vpop.f32.mrb[1].mxu1 }
 0x13e   :  { %v3664_v10 = vadd.f32 %v3663_v15, %v3662_v58  ;;  %4938 = vmatpush3.bf16.msra.mxu1 %v7382_v29  ;;  %2327 = vmatmul.mubr.f32.vlgmr.msra.gmra.mrb[14].mxu0 %v6694_v60  ;;  %v1841_v58 = vcombine.high %v6757_v4, %v6757_v4 }
 0x13f   :  { %4940 = vmatprep.subr.bf16.mxu1 %v7383_v21  ;;  %4950 = vmatpush3.bf16.msra.mxu0 %v7414_v44  ;;  %v7421_v44 = vld [vmem:[#allocation59_spill] sm:$0xff] }
 0x140   :  { %v451_v51 = vadd.f32 %v3664_v10, %v3629_v35  ;;  %4952 = vmatprep.subr.bf16.mxu0 %v7415_v6  ;;  %2601 = vmatprep.mubr.f32.mxu0 %v6615_v47  ;;  %v7418_v35 = vld [vmem:[#allocation57_spill] sm:$0xff]  ;;  %v1845_v15 = vrot.slane %v1841_v58, 2  ;;  %v7420_v10 = vand.u32 4294901760, %v6694_v60  ;;  %v7422_v6 = vld [vmem:[#allocation60_spill] sm:$0xff] }
 0x141   :  { %v7424_v60 = vld [vmem:[#allocation40_spill] sm:$0xff]  ;;  %v7425_v58 = vld [vmem:[#allocation37_spill] sm:$0xff] }
 0x142   :  { %4942 = vmatpush3.bf16.msra.mxu1 %v7386_v43 }
 0x143   :  { %4944 = vmatprep.subr.bf16.mxu1 %v7387_v42  ;;  %4954 = vmatpush3.bf16.msra.mxu0 %v7416_v18  ;;  %v6776_v18 = vand.u32 4294901760, %v1845_v15 }
 0x144   :  { %4956 = vmatprep.subr.bf16.mxu0 %v7417_v16 }
 0x146   :  { %4946 = vmatpush3.bf16.msra.mxu1 %v7390_v23 }
 0x147   :  { %4980 = vmatprep.subr.bf16.mxu1 %v7364_v25  ;;  %4958 = vmatpush3.bf16.msra.mxu0 %v7418_v35  ;;  %v7423_v25 = vld [vmem:[#allocation61_spill] sm:$0xff]  ;;  %v7426_v35 = vld [vmem:[#allocation71_spill] sm:$0xff] }
 0x148   :  { %4960 = vmatprep.subr.bf16.mxu0 %v7419_v56  ;;  %v7427_v56 = vld [vmem:[#allocation72_spill] sm:$0xff] }
 0x149   :  { %2435 = vmatmul.mubr.f32.vlgmr.msra.gmra.mrb[14].mxu1 %v7420_v10 }
 0x14a   :  { %4982 = vmatpush3.bf16.msra.mxu1 %v7365_v19  ;;  %2705 = vmatprep.mubr.f32.mxu1 %v6615_v47  ;;  %v6783_v19 = vsub.f32 %v1845_v15, %v6776_v18  ;;  %v7428_v15 = vld [vmem:[#allocation73_spill] sm:$0xff] }
 0x14b   :  { %4984 = vmatprep.subr.bf16.mxu1 %v7366_v30  ;;  %4962 = vmatpush3.bf16.msra.mxu0 %v7421_v44 }
 0x14c   :  { %4964 = vmatprep.subr.bf16.mxu0 %v7422_v6  ;;  %v7435_v6 = vld [vmem:[#allocation90_spill] sm:$0xff] }
 0x14e   :  { %4986 = vmatpush3.bf16.msra.mxu1 %v7367_v11  ;;  %v2810_v11 = vand.u32 4294901760, %v6783_v19 }
 0x14f   :  { %4988 = vmatprep.subr.bf16.mxu1 %v7368_v52  ;;  %4966 = vmatpush3.bf16.msra.mxu0 %v7423_v25 }
 0x150   :  { %4968 = vmatprep.subr.bf16.mxu0 %v7424_v60 }
 0x151   :  { %v3697_v47 = vpop.f32.mrb[2].mxu0 }
 0x152   :  { %4990 = vmatpush3.bf16.msra.mxu1 %v7370_v55  ;;  %v3698_v30 = vpop.f32.mrb[3].mxu0  ;;  %v2811_v55 = vsub.f32 %v6783_v19, %v2810_v11 }
 0x153   :  { %v3699_v16 = vadd.f32 %v3698_v30, %v3697_v47  ;;  %4992 = vmatprep.subr.bf16.mxu1 %v7371_v62  ;;  %4970 = vmatpush3.bf16.msra.mxu0 %v7425_v58  ;;  %v7429_v62 = vld [vmem:[#allocation74_spill] sm:$0xff]  ;;  %v7436_v30 = vld [vmem:[#allocation91_spill] sm:$0xff] }
 0x154   :  { %4972 = vmatprep.subr.bf16.mxu0 %v7426_v35  ;;  %v7437_v35 = vld [vmem:[#allocation92_spill] sm:$0xff] }
 0x155   :  { %v589_v52 = vadd.f32 %v3699_v16, %v451_v51 }
 0x156   :  { %4994 = vmatpush3.bf16.msra.mxu1 %v7374_v45  ;;  %v2812_v45 = vand.u32 4294901760, %v2811_v55  ;;  %v7438_v55 = vld [vmem:[#allocation93_spill] sm:$0xff] }
 0x157   :  { %4996 = vmatprep.subr.bf16.mxu1 %v7375_v1  ;;  %4974 = vmatpush3.bf16.msra.mxu0 %v7427_v56 }
 0x158   :  { %4976 = vmatprep.subr.bf16.mxu0 %v7428_v15 }
 0x15a   :  { %4998 = vmatpush3.bf16.msra.mxu1 %v7378_v13  ;;  %v1844_v13 = vrot.slane %v6757_v4, 2  ;;  %v7434_v4 = vld [vmem:[#allocation89_spill] sm:$0xff] }
 0x15b   :  { %5000 = vmatprep.subr.bf16.mxu1 %v7379_v37  ;;  %4978 = vmatpush3.bf16.msra.mxu0 %v7429_v62  ;;  %v7430_v37 = vld [vmem:[#allocation83_spill] sm:$0xff]  ;;  %v7439_v62 = vld [vmem:[#allocation94_spill] sm:$0xff] }
 0x15c   :  { %v3732_v10 = vpop.f32.mrb[2].mxu1  ;;  %5012 = vmatprep.subr.bf16.mxu0 %v7311_v48 }
 0x15d   :  { %v3733_v51 = vpop.f32.mrb[3].mxu1 }
 0x15e   :  { %v3734_v1 = vadd.f32 %v3733_v51, %v3732_v10  ;;  %5002 = vmatpush3.bf16.msra.mxu1 %v7382_v29  ;;  %2603 = vmatmul.mubr.f32.vlgmr.msra.gmra.mrb[16].mxu0 %v6686_v49  ;;  %v7431_v29 = vld [vmem:[#allocation84_spill] sm:$0xff]  ;;  %v7443_v51 = vld [vmem:[#allocation98_spill] sm:$0xff] }
 0x15f   :  { %5004 = vmatprep.subr.bf16.mxu1 %v7383_v21  ;;  %5014 = vmatpush3.bf16.msra.mxu0 %v7316_v8  ;;  %v6817_v21 = vand.u32 4294901760, %v1844_v13 }
 0x160   :  { %v697_v44 = vadd.f32 %v3734_v1, %v589_v52  ;;  %5016 = vmatprep.subr.bf16.mxu0 %v7318_v34  ;;  %2813 = vmatprep.mubr.f32.mxu0 %v2812_v45  ;;  %v7440_v45 = vld [vmem:[#allocation95_spill] sm:$0xff] }
 0x161   :  { %v7445_v1 = vld [vmem:[#allocation79_spill] sm:$0xff] }
 0x162   :  { %5006 = vmatpush3.bf16.msra.mxu1 %v7386_v43  ;;  %v6825_v43 = vsub.f32 %v1844_v13, %v6817_v21  ;;  %v7448_v13 = vld [vmem:[#allocation75_spill] sm:$0xff] }
 0x163   :  { %5008 = vmatprep.subr.bf16.mxu1 %v7387_v42  ;;  %5018 = vmatpush3.bf16.msra.mxu0 %v7321_v54  ;;  %v7432_v42 = vld [vmem:[#allocation87_spill] sm:$0xff] }
 0x164   :  { %5020 = vmatprep.subr.bf16.mxu0 %v7322_v24  ;;  %v2816_v60 = vand.u32 4294901760, %v6825_v43 }
 0x166   :  { %5010 = vmatpush3.bf16.msra.mxu1 %v7390_v23  ;;  %v7433_v23 = vld [vmem:[#allocation88_spill] sm:$0xff]  ;;  %v2817_v58 = vsub.f32 %v6825_v43, %v2816_v60 }
 0x167   :  { %5044 = vmatprep.subr.bf16.mxu1 %v7430_v37  ;;  %5022 = vmatpush3.bf16.msra.mxu0 %v6134_v38  ;;  %v7449_v37 = vld [vmem:[#allocation85_spill] sm:$0xff] }
 0x168   :  { %5024 = vmatprep.subr.bf16.mxu0 %v6146_v9  ;;  %v2818_v52 = vand.u32 4294901760, %v2817_v58 }
 0x169   :  { %2707 = vmatmul.mubr.f32.vlgmr.msra.gmra.mrb[16].mxu1 %v6686_v49 }
 0x16a   :  { %5046 = vmatpush3.bf16.msra.mxu1 %v7431_v29  ;;  %3049 = vmatprep.mubr.f32.mxu1 %v6776_v18  ;;  %v7450_v29 = vld [vmem:[#allocation86_spill] sm:$0xff] }
 0x16b   :  { %5048 = vmatprep.subr.bf16.mxu1 %v7432_v42  ;;  %5026 = vmatpush3.bf16.msra.mxu0 %v6150_v7  ;;  %v7451_v42 = vld [vmem:[#allocation76_spill] sm:$0xff] }
 0x16c   :  { %5028 = vmatprep.subr.bf16.mxu0 %v6199_v59 }
 0x16e   :  { %5050 = vmatpush3.bf16.msra.mxu1 %v7433_v23 }
 0x16f   :  { %5052 = vmatprep.subr.bf16.mxu1 %v7434_v4  ;;  %5030 = vmatpush3.bf16.msra.mxu0 %v6213_v63 }
 0x170   :  { %5032 = vmatprep.subr.bf16.mxu0 %v6230_v40 }
 0x171   :  { %v3767_v49 = vpop.f32.mrb[4].mxu0 }
 0x172   :  { %5054 = vmatpush3.bf16.msra.mxu1 %v7435_v6  ;;  %v3768_v25 = vpop.f32.mrb[5].mxu0 }
 0x173   :  { %v3769_v47 = vadd.f32 %v3768_v25, %v3767_v49  ;;  %5056 = vmatprep.subr.bf16.mxu1 %v7436_v30  ;;  %5034 = vmatpush3.bf16.msra.mxu0 %v6263_v27  ;;  %v7453_v49 = vld [vmem:[#allocation78_spill] sm:$0xff]  ;;  %v7454_v25 = vld [vmem:[#allocation80_spill] sm:$0xff] }
 0x174   :  { %5036 = vmatprep.subr.bf16.mxu0 %v6270_v3 }
 0x175   :  { %v865_v16 = vadd.f32 %v3769_v47, %v697_v44  ;;  %v7447_v44 = vld [vmem:[#allocation82_spill] sm:$0xff] }
 0x176   :  { %5058 = vmatpush3.bf16.msra.mxu1 %v6305_v28 }
 0x177   :  { %5060 = vmatprep.subr.bf16.mxu1 %v7437_v35  ;;  %5038 = vmatpush3.bf16.msra.mxu0 %v6298_v31 }
 0x178   :  { %5040 = vmatprep.subr.bf16.mxu0 %v6377_v53 }
 0x17a   :  { %5062 = vmatpush3.bf16.msra.mxu1 %v6375_v39  ;;  %v7442_v39 = vld [vmem:[#allocation97_spill] sm:$0xff] }
 0x17b   :  { %5064 = vmatprep.subr.bf16.mxu1 %v6381_v36  ;;  %5042 = vmatpush3.bf16.msra.mxu0 %v6379_v20  ;;  %v7441_v36 = vld [vmem:[#allocation96_spill] sm:$0xff] }
 0x17c   :  { %v3802_v56 = vpop.f32.mrb[4].mxu1  ;;  %5076 = vmatprep.subr.bf16.mxu0 %v6406_v2  ;;  %v7444_v2 = vld [vmem:[#allocation99_spill] sm:$0xff] }
 0x17d   :  { %v3803_v28 = vpop.f32.mrb[5].mxu1 }
 0x17e   :  { %v3804_v15 = vadd.f32 %v3803_v28, %v3802_v56  ;;  %5066 = vmatpush3.bf16.msra.mxu1 %v6408_v46  ;;  %2819 = vmatmul.mubr.f32.vlgmr.msra.gmra.mrb[18].mxu0 %v2818_v52  ;;  %v7446_v46 = vld [vmem:[#allocation81_spill] sm:$0xff] }
 0x17f   :  { %5068 = vmatprep.subr.bf16.mxu1 %v7438_v55  ;;  %5078 = vmatpush3.bf16.msra.mxu0 %v7439_v62 }
 0x180   :  { %v969_v10 = vadd.f32 %v3804_v15, %v865_v16  ;;  %5080 = vmatprep.subr.bf16.mxu0 %v7440_v45  ;;  %3186 = vmatprep.mubr.f32.mxu0 %v6783_v19  ;;  %v5289_v15 = vmov 0.0  }
 0x181   :  { %3576 = vst [vmem:[#allocation7] sm:$0x1] %v5289_v15  ;;  %3577 = vst [vmem:[#allocation7 + $0x7] sm:$0x1] %v5289_v15 }
 0x182   :  { %5070 = vmatpush3.bf16.msra.mxu1 %v7441_v36  ;;  %3578 = vst [vmem:[#allocation7 + $0x3] sm:$0x3] %v5289_v15 }
 0x183   :  { %5072 = vmatprep.subr.bf16.mxu1 %v7442_v39  ;;  %5082 = vmatpush3.bf16.msra.mxu0 %v7443_v51 }
 0x184   :  { %5084 = vmatprep.subr.bf16.mxu0 %v7444_v2 }
 0x186   :  { %5074 = vmatpush3.bf16.msra.mxu1 %v7445_v1 }
 0x187   :  { %5108 = vmatprep.subr.bf16.mxu1 %v7311_v48  ;;  %5086 = vmatpush3.bf16.msra.mxu0 %v7446_v46 }
 0x188   :  { %5088 = vmatprep.subr.bf16.mxu0 %v7447_v44 }
 0x189   :  { %3051 = vmatmul.mubr.f32.vlgmr.msra.gmra.mrb[18].mxu1 %v6817_v21 }
 0x18a   :  { %5110 = vmatpush3.bf16.msra.mxu1 %v7316_v8  ;;  %3293 = vmatprep.mubr.f32.mxu1 %v2810_v11  ;;  %v7452_v11 = vld [vmem:[#allocation77_spill] sm:$0xff] }
 0x18b   :  { %5112 = vmatprep.subr.bf16.mxu1 %v7318_v34  ;;  %5090 = vmatpush3.bf16.msra.mxu0 %v7448_v13 }
 0x18c   :  { %5092 = vmatprep.subr.bf16.mxu0 %v7449_v37 }
 0x18e   :  { %5114 = vmatpush3.bf16.msra.mxu1 %v7321_v54 }
 0x18f   :  { %5116 = vmatprep.subr.bf16.mxu1 %v7322_v24  ;;  %5094 = vmatpush3.bf16.msra.mxu0 %v7450_v29 }
 0x190   :  { %5096 = vmatprep.subr.bf16.mxu0 %v7451_v42 }
 0x191   :  { %v3837_v23 = vpop.f32.mrb[6].mxu0 }
 0x192   :  { %5118 = vmatpush3.bf16.msra.mxu1 %v6134_v38  ;;  %v3838_v4 = vpop.f32.mrb[7].mxu0 }
 0x193   :  { %v3839_v19 = vadd.f32 %v3838_v4, %v3837_v23  ;;  %5120 = vmatprep.subr.bf16.mxu1 %v6146_v9  ;;  %5098 = vmatpush3.bf16.msra.mxu0 %v7452_v11 }
 0x194   :  { %5100 = vmatprep.subr.bf16.mxu0 %v7453_v49 }
 0x195   :  { %v1081_v6 = vadd.f32 %v3839_v19, %v969_v10 }
 0x196   :  { %5122 = vmatpush3.bf16.msra.mxu1 %v6150_v7 }
 0x197   :  { %5124 = vmatprep.subr.bf16.mxu1 %v6199_v59  ;;  %5102 = vmatpush3.bf16.msra.mxu0 %v7454_v25 }
 0x198   :  { %5104 = vmatprep.subr.bf16.mxu0 %v6510_v32 }
 0x19a   :  { %5126 = vmatpush3.bf16.msra.mxu1 %v6213_v63 }
 0x19b   :  { %5128 = vmatprep.subr.bf16.mxu1 %v6230_v40  ;;  %5106 = vmatpush3.bf16.msra.mxu0 %v6517_v22  ;;  %v7456_v22 = vld [vmem:[#allocation101_spill] sm:$0xff] }
 0x19c   :  { %v3872_v47 = vpop.f32.mrb[6].mxu1  ;;  %5140 = vmatprep.subr.bf16.mxu0 %v6524_v50 }
 0x19d   :  { %v3873_v30 = vpop.f32.mrb[7].mxu1 }
 0x19e   :  { %v3874_v16 = vadd.f32 %v3873_v30, %v3872_v47  ;;  %5130 = vmatpush3.bf16.msra.mxu1 %v6263_v27  ;;  %3189 = vmatmul.mubr.f32.vlgmr.msra.gmra.mrb[20].mxu0 %v6825_v43 }
 0x19f   :  { %5132 = vmatprep.subr.bf16.mxu1 %v6270_v3  ;;  %5142 = vmatpush3.bf16.msra.mxu0 %v6533_v14 }
 0x1a0   :  { %v1313_v32 = vadd.f32 %v3874_v16, %v1081_v6  ;;  %5144 = vmatprep.subr.bf16.mxu0 %v6540_v41  ;;  %3463 = vmatprep.mubr.f32.mxu0 %v6776_v18 }
 0x1a2   :  { %5134 = vmatpush3.bf16.msra.mxu1 %v6298_v31 }
 0x1a3   :  { %5136 = vmatprep.subr.bf16.mxu1 %v6377_v53  ;;  %5146 = vmatpush3.bf16.msra.mxu0 %v6550_v61 }
 0x1a4   :  { %5148 = vmatprep.subr.bf16.mxu0 %v6557_v57 }
 0x1a6   :  { %5138 = vmatpush3.bf16.msra.mxu1 %v6379_v20 }
 0x1a7   :  { %5172 = vmatprep.subr.bf16.mxu1 %v7311_v48  ;;  %5150 = vmatpush3.bf16.msra.mxu0 %v6569_v33 }
 0x1a8   :  { %5152 = vmatprep.subr.bf16.mxu0 %v6576_v12 }
 0x1a9   :  { %3297 = vmatmul.mubr.f32.vlgmr.msra.gmra.mrb[20].mxu1 %v2816_v60 }
 0x1aa   :  { %5174 = vmatpush3.bf16.msra.mxu1 %v7316_v8  ;;  %3567 = vmatprep.mubr.f32.mxu1 %v6776_v18 }
 0x1ab   :  { %5176 = vmatprep.subr.bf16.mxu1 %v7318_v34  ;;  %5154 = vmatpush3.bf16.msra.mxu0 %v6587_v26  ;;  %v7455_v34 = vld [vmem:[#allocation100_spill] sm:$0xff] }
 0x1ac   :  { %5156 = vmatprep.subr.bf16.mxu0 %v6594_v5 }
 0x1ae   :  { %5178 = vmatpush3.bf16.msra.mxu1 %v7321_v54  ;;  %v7458_v54 = vld [vmem:[#allocation103_spill] sm:$0xff] }
 0x1af   :  { %5180 = vmatprep.subr.bf16.mxu1 %v7322_v24  ;;  %5158 = vmatpush3.bf16.msra.mxu0 %v6606_v17  ;;  %v7457_v24 = vld [vmem:[#allocation102_spill] sm:$0xff] }
 0x1b0   :  { %5160 = vmatprep.subr.bf16.mxu0 %v6613_v0 }
 0x1b1   :  { %v3907_v14 = vpop.f32.mrb[8].mxu0 }
 0x1b2   :  { %5182 = vmatpush3.bf16.msra.mxu1 %v6134_v38  ;;  %v3908_v50 = vpop.f32.mrb[9].mxu0  ;;  %v7459_v38 = vld [vmem:[#allocation104_spill] sm:$0xff] }
 0x1b3   :  { %v3909_v8 = vadd.f32 %v3908_v50, %v3907_v14  ;;  %5184 = vmatprep.subr.bf16.mxu1 %v6146_v9  ;;  %5162 = vmatpush3.bf16.msra.mxu0 %v7455_v34 }
 0x1b4   :  { %5164 = vmatprep.subr.bf16.mxu0 %v7456_v22 }
 0x1b5   :  { %v1451_v48 = vadd.f32 %v3909_v8, %v1313_v32 }
 0x1b6   :  { %5186 = vmatpush3.bf16.msra.mxu1 %v6150_v7 }
 0x1b7   :  { %5188 = vmatprep.subr.bf16.mxu1 %v6199_v59  ;;  %5166 = vmatpush3.bf16.msra.mxu0 %v7457_v24 }
 0x1b8   :  { %5168 = vmatprep.subr.bf16.mxu0 %v7458_v54 }
 0x1ba   :  { %5190 = vmatpush3.bf16.msra.mxu1 %v6213_v63 }
 0x1bb   :  { %5192 = vmatprep.subr.bf16.mxu1 %v6230_v40  ;;  %5170 = vmatpush3.bf16.msra.mxu0 %v7459_v38 }
 0x1bc   :  { %v3942_v9 = vpop.f32.mrb[8].mxu1 }
 0x1bd   :  { %v3943_v41 = vpop.f32.mrb[9].mxu1 }
 0x1be   :  { %v3944_v61 = vadd.f32 %v3943_v41, %v3942_v9  ;;  %5194 = vmatpush3.bf16.msra.mxu1 %v6263_v27  ;;  %3465 = vmatmul.mubr.f32.vlgmr.msra.gmra.mrb[22].mxu0 %v6817_v21 }
 0x1bf   :  { %5196 = vmatprep.subr.bf16.mxu1 %v6270_v3 }
 0x1c0   :  { %v1559_v59 = vadd.f32 %v3944_v61, %v1451_v48 }
 0x1c2   :  { %5198 = vmatpush3.bf16.msra.mxu1 %v6298_v31 }
 0x1c3   :  { %5200 = vmatprep.subr.bf16.mxu1 %v6377_v53 }
 0x1c6   :  { %5202 = vmatpush3.bf16.msra.mxu1 %v6379_v20 }
 0x1c9   :  { %3569 = vmatmul.mubr.f32.vlgmr.msra.gmra.mrb[22].mxu1 %v6817_v21 }
 0x1d1   :  { %v3977_v40 = vpop.f32.mrb[10].mxu0 }
 0x1d2   :  { %v3978_v7 = vpop.f32.mrb[11].mxu0 }
 0x1d3   :  { %v3979_v63 = vadd.f32 %v3978_v7, %v3977_v40 }
 0x1d5   :  { %v1727_v57 = vadd.f32 %v3979_v63, %v1559_v59 }
 0x1dc   :  { %v4012_v33 = vpop.f32.mrb[10].mxu1 }
 0x1dd   :  { %v4013_v12 = vpop.f32.mrb[11].mxu1 }
 0x1de   :  { %v4014_v27 = vadd.f32 %v4013_v12, %v4012_v33 }
 0x1e0   :  { %v1831_v26 = vadd.f32 %v4014_v27, %v1727_v57 }
 0x1e2   :  { %v1834_v5 = vmax.f32 %v1831_v26, 0.0 }
 0x1e4   :  { %1835 = vst [vmem:[#allocation7 + $0x1] sm:$0x3] %v1834_v5 }
 0x1f1   :  { %v4047_v3 = vpop.f32.mrb[12].mxu0 }
 0x1f2   :  { %v4048_v17 = vpop.f32.mrb[13].mxu0 }
 0x1f3   :  { %v4049_v0 = vadd.f32 %v4048_v17, %v4047_v3 }
 0x1fc   :  { %v4082_v31 = vpop.f32.mrb[12].mxu1 }
 0x1fd   :  { %v4083_v18 = vpop.f32.mrb[13].mxu1 }
 0x1fe   :  { %v4084_v53 = vadd.f32 %v4083_v18, %v4082_v31 }
 0x200   :  { %v2191_v43 = vadd.f32 %v4084_v53, %v4049_v0 }
 0x211   :  { %v4117_v20 = vpop.f32.mrb[14].mxu0 }
 0x212   :  { %v4118_v60 = vpop.f32.mrb[15].mxu0 }
 0x213   :  { %v4119_v21 = vadd.f32 %v4118_v60, %v4117_v20 }
 0x215   :  { %v2329_v58 = vadd.f32 %v4119_v21, %v2191_v43 }
 0x21c   :  { %v4152_v35 = vpop.f32.mrb[14].mxu1 }
 0x21d   :  { %v4153_v52 = vpop.f32.mrb[15].mxu1 }
 0x21e   :  { %v4154_v56 = vadd.f32 %v4153_v52, %v4152_v35 }
 0x220   :  { %v2437_v28 = vadd.f32 %v4154_v56, %v2329_v58 }
 0x231   :  { %v4187_v55 = vpop.f32.mrb[16].mxu0 }
 0x232   :  { %v4188_v62 = vpop.f32.mrb[17].mxu0 }
 0x233   :  { %v4189_v10 = vadd.f32 %v4188_v62, %v4187_v55 }
 0x235   :  { %v2605_v45 = vadd.f32 %v4189_v10, %v2437_v28 }
 0x23c   :  { %v4222_v36 = vpop.f32.mrb[16].mxu1 }
 0x23d   :  { %v4223_v39 = vpop.f32.mrb[17].mxu1 }
 0x23e   :  { %v4224_v51 = vadd.f32 %v4223_v39, %v4222_v36 }
 0x240   :  { %v2709_v2 = vadd.f32 %v4224_v51, %v2605_v45 }
 0x251   :  { %v4257_v1 = vpop.f32.mrb[18].mxu0 }
 0x252   :  { %v4258_v46 = vpop.f32.mrb[19].mxu0 }
 0x253   :  { %v4259_v44 = vadd.f32 %v4258_v46, %v4257_v1 }
 0x255   :  { %v2821_v13 = vadd.f32 %v4259_v44, %v2709_v2 }
 0x25c   :  { %v4292_v37 = vpop.f32.mrb[18].mxu1 }
 0x25d   :  { %v4293_v29 = vpop.f32.mrb[19].mxu1 }
 0x25e   :  { %v4294_v42 = vadd.f32 %v4293_v29, %v4292_v37 }
 0x260   :  { %v3053_v23 = vadd.f32 %v4294_v42, %v2821_v13 }
 0x271   :  { %v4327_v4 = vpop.f32.mrb[20].mxu0 }
 0x272   :  { %v4328_v19 = vpop.f32.mrb[21].mxu0 }
 0x273   :  { %v4329_v11 = vadd.f32 %v4328_v19, %v4327_v4 }
 0x275   :  { %v3191_v49 = vadd.f32 %v4329_v11, %v3053_v23 }
 0x27c   :  { %v4362_v6 = vpop.f32.mrb[20].mxu1 }
 0x27d   :  { %v4363_v25 = vpop.f32.mrb[21].mxu1 }
 0x27e   :  { %v4364_v47 = vadd.f32 %v4363_v25, %v4362_v6 }
 0x280   :  { %v3299_v30 = vadd.f32 %v4364_v47, %v3191_v49 }
 0x291   :  { %v4397_v16 = vpop.f32.mrb[22].mxu0 }
 0x292   :  { %v4398_v32 = vpop.f32.mrb[23].mxu0 }
 0x293   :  { %v4399_v14 = vadd.f32 %v4398_v32, %v4397_v16 }
 0x295   :  { %v3467_v50 = vadd.f32 %v4399_v14, %v3299_v30 }
 0x29c   :  { %v4432_v8 = vpop.f32.mrb[22].mxu1 }
 0x29d   :  { %v4433_v34 = vpop.f32.mrb[23].mxu1 }
 0x29e   :  { %v4434_v22 = vadd.f32 %v4433_v34, %v4432_v8 }
 0x2a0   :  { %v3571_v48 = vadd.f32 %v4434_v22, %v3467_v50 }
 0x2a2   :  { %v3574_v24 = vmax.f32 %v3571_v48, 0.0 }
 0x2a4   :  { %3575 = vst [vmem:[#allocation7 + $0x5] sm:$0x3] %v3574_v24 }
 0x2a5   :  { %5268 = shalt.err (!%p5265_p6)
}
 0x2a6   :  { %s5269_s10 = scalar_lea.hbm %s6939_s2, 128 }
 0x2a7   :  { %p5270_p7 = scmp.ne.s32.totalorder %s6939_s2, %s5269_s10  ;;  %p5273_p8 = scmp.lt.u32.totalorder %s5269_s10, %s6939_s2 }
 0x2a9   :  { %p5275_p9 = pnand %p5273_p8, %p5270_p7 }
 0x2ab   :  { %5278 = shalt.err (!%p5275_p9)
}
 0x2ac   :  { %3588 = dma.vmem_to_hbm [thread:$0]  %s3586_s6, 128, %s6939_s2, [#allocation4]  }
 0x2ad   :  { %5283 = dma.done.wait [#allocation4], 128  }
 0x2ae   :  { %5284 = vsyncadd [#allocation4], 4294967168 }
 0x2af   :  { %3592 = vsyncpa [#allocation3], 1 }
 0x2b0   :  { %3593 = vsyncpa [#allocation6], 1 }
 0x2b1   :  { %3594 = vsyncpa [#allocation4], 1 }

</bundles_post_ra>
